<compile_context>
chip_gen: v7x
topology: tpu7x:2x2x1
jax: 0.10.0
libtpu: 0.0.40
codegen_flags: <defaults>
</compile_context>

<pallas_src>
import functools
import numpy as np
import jax
import jax.numpy as jnp
from jax import lax
from jax.experimental import pallas as pl
from jax.experimental.pallas import tpu as pltpu

COEFF = 12.0
EPS = 1e-5  # nn.InstanceNorm2d default
PRECISION = lax.Precision.HIGHEST  # keep f32 mantissa on the MXU


def _split_channels(channels, num_groups):
    split = [channels // num_groups for _ in range(num_groups)]
    split[0] += channels - sum(split)
    return split


def _pool_matrix(size, kernel, stride, padding, out_size):
    """Selection-sum matrix S (out_size, size): S[o, h] = 1 if h is in window o.

    Zero padding contributes nothing to numerator or denominator of lip2d and the
    1/(k*k) of avg_pool cancels in the ratio, so sum-pooling over valid cells
    reproduces F.avg_pool2d(num)/F.avg_pool2d(den) exactly."""
    S = np.zeros((out_size, size), np.float32)
    for o in range(out_size):
        start = o * stride - padding
        for t in range(kernel):
            h = start + t
            if 0 <= h < size:
                S[o, h] = 1.0
    return S


def _ap_kernel(x_ref, wtab_ref, gamma_ref, beta_ref, s_ref, m_ref, mt_ref, p_ref,
               o_ref, *, H, W, Cb, KMAX, PMAX, coeff):
    L = W * Cb
    X = x_ref[0, 0]          # (Hp, Wp*Cb)   channels-last, padded slab
    wt = wtab_ref[0]         # (KMAX*KMAX, W*Cb)  per-tap, per-channel weights (pre-broadcast)

    # --- depthwise conv, unified KMAX x KMAX taps (zero taps for smaller kernels) ---
    # A W-shift by j is a contiguous lane slice because channels are innermost.
    acc = jnp.zeros((H, L), jnp.float32)
    for i in range(KMAX):
        for j in range(KMAX):
            t = i * KMAX + j
            win = X[i:i + H, j * Cb:j * Cb + L]
            acc = acc + wt[t:t + 1, :] * win

    # --- InstanceNorm2d (biased variance, eps=1e-5) with affine, per channel ---
    inv_hw = 1.0 / float(H * W)
    rowsum = jnp.sum(acc, axis=0, keepdims=True)          # (1, L)
    rowsq = jnp.sum(acc * acc, axis=0, keepdims=True)     # (1, L)
    stats = jnp.dot(jnp.concatenate([rowsum, rowsq], axis=0), m_ref[...],
                    precision=PRECISION,
                    preferred_element_type=jnp.float32)   # (2, Cb) per-channel sums
    mean = stats[0:1, :] * inv_hw
    var = stats[1:2, :] * inv_hw - mean * mean
    inv_std = lax.rsqrt(var + EPS)
    scale = gamma_ref[0] * inv_std                         # (1, Cb)
    shift = beta_ref[0] - mean * scale                     # (1, Cb)
    sb = jnp.dot(jnp.concatenate([scale, shift], axis=0), mt_ref[...],
                 precision=PRECISION,
                 preferred_element_type=jnp.float32)       # (2, L) lane-broadcast
    bn = acc * sb[0:1, :] + sb[1:2, :]

    # --- SoftGate + exp ---
    sig = 1.0 / (1.0 + jnp.exp(-bn))
    w = jnp.exp(coeff * sig)                               # (H, L)

    # --- lip2d pooling (3x3, stride 2, pad 1) via batched selection matmuls ---
    xv = X[PMAX:PMAX + H, PMAX * Cb:PMAX * Cb + L]          # original input slab
    xw = xv * w
    S = s_ref[...]                                          # (OH, H)
    P = p_ref[...]                                          # (W*Cb, OW*Cb)
    num = jnp.dot(jnp.dot(S, xw, precision=PRECISION,
                          preferred_element_type=jnp.float32), P,
                  precision=PRECISION, preferred_element_type=jnp.float32)
    den = jnp.dot(jnp.dot(S, w, precision=PRECISION,
                          preferred_element_type=jnp.float32), P,
                  precision=PRECISION, preferred_element_type=jnp.float32)
    o_ref[0, 0] = (num / den).astype(o_ref.dtype)


def ap_forward(x, conv_weights, gamma, beta, kernel_group,
               kernel_size=3, stride=2, padding=1, coeff=COEFF, c_block=None):
    """x: (N, C, H, W); conv_weights: list of (split[g], 1, k_g, k_g) depthwise weights."""
    N, C, H, W = x.shape
    split = _split_channels(C, len(kernel_group))
    KMAX = max(kernel_group)
    PMAX = KMAX // 2
    KK = KMAX * KMAX
    Hp, Wp = H + 2 * PMAX, W + 2 * PMAX

    Cb = c_block if (c_block is not None and C % c_block == 0) else C
    NB = C // Cb

    OH = (H + 2 * padding - kernel_size) // stride + 1
    OW = (W + 2 * padding - kernel_size) // stride + 1

    # ---- layout glue (outside the kernel): channels-last, channel-blocked, padded ----
    xpad = jnp.pad(x, ((0, 0), (0, 0), (PMAX, PMAX), (PMAX, PMAX)))
    xin = xpad.transpose(0, 2, 3, 1)                       # (N, Hp, Wp, C)
    xin = xin.reshape(N, Hp, Wp, NB, Cb).transpose(0, 3, 1, 2, 4)
    xin = xin.reshape(N, NB, Hp, Wp * Cb)

    # ---- constant tables ----
    Sh = _pool_matrix(H, kernel_size, stride, padding, OH)          # (OH, H)
    Sw = _pool_matrix(W, kernel_size, stride, padding, OW)          # (OW, W)
    eye = np.eye(Cb, dtype=np.float32)
    P = np.kron(Sw.T, eye)                                          # (W*Cb, OW*Cb)
    M = np.kron(np.ones((W, 1), np.float32), eye)                   # (W*Cb, Cb)
    MT = np.ascontiguousarray(M.T)                                  # (Cb, W*Cb)

    # Unified per-channel KMAX x KMAX weight table (smaller kernels zero-embedded,
    # centered: offset (KMAX-k)//2 == PMAX - k//2), pre-broadcast along W -> lanes.
    Wfull = np.zeros((C, KMAX, KMAX), np.float32)
    c0 = 0
    for g, k in enumerate(kernel_group):
        d = (KMAX - k) // 2
        wg = np.asarray(conv_weights[g], np.float32).reshape(split[g], k, k)
        Wfull[c0:c0 + split[g], d:d + k, d:d + k] = wg
        c0 += split[g]
    wtab = Wfull.reshape(NB, Cb, KMAX, KMAX).transpose(0, 2, 3, 1).reshape(NB, KK, 1, Cb)
    wtab = np.tile(wtab, (1, 1, W, 1)).reshape(NB, KK, W * Cb)

    gamma_b = jnp.asarray(gamma, jnp.float32).reshape(NB, 1, Cb)
    beta_b = jnp.asarray(beta, jnp.float32).reshape(NB, 1, Cb)

    kern = functools.partial(_ap_kernel, H=H, W=W, Cb=Cb, KMAX=KMAX, PMAX=PMAX,
                             coeff=float(coeff))

    out = pl.pallas_call(
        kern,
        out_shape=jax.ShapeDtypeStruct((N, NB, OH, OW * Cb), x.dtype),
        grid=(N, NB),
        in_specs=[
            pl.BlockSpec((1, 1, Hp, Wp * Cb), lambda n, b: (n, b, 0, 0)),   # input slab
            pl.BlockSpec((1, KK, W * Cb), lambda n, b: (b, 0, 0)),          # tap weights (VMEM)
            pl.BlockSpec((1, 1, Cb), lambda n, b: (b, 0, 0)),               # gamma (VMEM)
            pl.BlockSpec((1, 1, Cb), lambda n, b: (b, 0, 0)),               # beta  (VMEM)
            pl.BlockSpec((OH, H), lambda n, b: (0, 0)),                     # H pool matrix
            pl.BlockSpec((W * Cb, Cb), lambda n, b: (0, 0)),                # channel reduce
            pl.BlockSpec((Cb, W * Cb), lambda n, b: (0, 0)),                # channel bcast
            pl.BlockSpec((W * Cb, OW * Cb), lambda n, b: (0, 0)),           # W pool (kron)
        ],
        out_specs=pl.BlockSpec((1, 1, OH, OW * Cb), lambda n, b: (n, b, 0, 0)),
        compiler_params=pltpu.CompilerParams(
            dimension_semantics=("parallel", "parallel"),
            vmem_limit_bytes=64 * 1024 * 1024),
    )(xin, jnp.asarray(wtab), gamma_b, beta_b,
      jnp.asarray(Sh), jnp.asarray(M), jnp.asarray(MT), jnp.asarray(P))

    # layout glue back to NCHW
    out = out.reshape(N, NB, OH, OW, Cb).transpose(0, 1, 4, 2, 3).reshape(N, C, OH, OW)
    return out


def ap_reference(x, conv_weights, gamma, beta, kernel_group,
                 kernel_size=3, stride=2, padding=1, coeff=COEFF):
    """Pure-JAX reference mirroring the PyTorch module (full-precision conv)."""
    C = x.shape[1]
    split = _split_channels(C, len(kernel_group))
    outs, start = [], 0
    for g, k in enumerate(kernel_group):
        cg = split[g]
        xg = x[:, start:start + cg]
        y = lax.conv_general_dilated(
            xg, conv_weights[g], window_strides=(1, 1),
            padding=[(k // 2, k // 2)] * 2,
            dimension_numbers=('NCHW', 'OIHW', 'NCHW'),
            feature_group_count=cg,
            precision=lax.Precision.HIGHEST)
        outs.append(y)
        start += cg
    conv = jnp.concatenate(outs, axis=1)
    mean = jnp.mean(conv, axis=(2, 3), keepdims=True)
    var = jnp.mean((conv - mean) ** 2, axis=(2, 3), keepdims=True)
    bn = (conv - mean) / jnp.sqrt(var + EPS) * gamma.reshape(1, -1, 1, 1) + beta.reshape(1, -1, 1, 1)
    w = jnp.exp(jax.nn.sigmoid(bn) * coeff)

    def avg_pool(a):
        s = lax.reduce_window(a, 0.0, lax.add, (1, 1, kernel_size, kernel_size),
                              (1, 1, stride, stride),
                              [(0, 0), (0, 0), (padding, padding), (padding, padding)])
        return s / float(kernel_size * kernel_size)

    return avg_pool(x * w) / avg_pool(w)


if __name__ == "__main__":
    N, C, H, W = 2, 4, 16, 16
    kernel_group = (3, 5)        # MDConv kernel sizes -> split_channels = [2, 2]

    key = jax.random.PRNGKey(0)
    kx, kw, kg, kb = jax.random.split(key, 4)
    x = jax.random.normal(kx, (N, C, H, W), jnp.float32)

    split = _split_channels(C, len(kernel_group))
    wkeys = jax.random.split(kw, len(kernel_group))
    conv_weights = []
    for g, k in enumerate(kernel_group):
        wg = 0.1 * jax.random.normal(wkeys[g], (split[g], 1, k, k), jnp.float32)
        conv_weights.append(wg)
    gamma = 1.0 + 0.1 * jax.random.normal(kg, (C,), jnp.float32)
    beta = 0.1 * jax.random.normal(kb, (C,), jnp.float32)

    # c_block=2 exercises the channel-blocked grid path (grid = (N, C // c_block)).
    out = ap_forward(x, conv_weights, gamma, beta, kernel_group, c_block=2)
    out = jax.block_until_ready(out)

    ref = ap_reference(x, conv_weights, gamma, beta, kernel_group)
    np.testing.assert_allclose(np.asarray(out), np.asarray(ref), rtol=2e-3, atol=2e-3)
    print("KERNEL_OK")
</pallas_src>

<mosaic_0001>
module attributes {stable_mosaic.version = 11 : i64} {
  func.func @_ap_kernel(%arg0: i32, %arg1: i32, %arg2: memref<1x1x20x40xf32, #tpu.memory_space<vmem>>, %arg3: memref<1x25x32xf32, #tpu.memory_space<vmem>>, %arg4: memref<1x1x2xf32, #tpu.memory_space<vmem>>, %arg5: memref<1x1x2xf32, #tpu.memory_space<vmem>>, %arg6: memref<8x16xf32, #tpu.memory_space<vmem>>, %arg7: memref<32x2xf32, #tpu.memory_space<vmem>>, %arg8: memref<2x32xf32, #tpu.memory_space<vmem>>, %arg9: memref<32x16xf32, #tpu.memory_space<vmem>>, %arg10: memref<1x1x8x16xf32, #tpu.memory_space<vmem>>) attributes {dimension_semantics = [#tpu.dimension_semantics<parallel>, #tpu.dimension_semantics<parallel>], iteration_bounds = array<i64: 2, 2>, scalar_prefetch = 0 : i64, scratch_operands = 0 : i64, tpu.core_type = #tpu.core_type<tc>, window_params = [{transform_indices = @transform_0, window_bounds = array<i64: 1, 1, 20, 40>}, {transform_indices = @transform_1, window_bounds = array<i64: 1, 25, 32>}, {transform_indices = @transform_2, window_bounds = array<i64: 1, 1, 2>}, {transform_indices = @transform_3, window_bounds = array<i64: 1, 1, 2>}, {pipeline_mode = #tpu.pipeline_mode<synchronous>, transform_indices = @transform_4, window_bounds = array<i64: 8, 16>}, {pipeline_mode = #tpu.pipeline_mode<synchronous>, transform_indices = @transform_5, window_bounds = array<i64: 32, 2>}, {pipeline_mode = #tpu.pipeline_mode<synchronous>, transform_indices = @transform_6, window_bounds = array<i64: 2, 32>}, {pipeline_mode = #tpu.pipeline_mode<synchronous>, transform_indices = @transform_7, window_bounds = array<i64: 32, 16>}, {transform_indices = @transform_8, window_bounds = array<i64: 1, 1, 8, 16>}]} {
    %c0 = arith.constant 0 : index
    %c0_0 = arith.constant 0 : index
    %c0_1 = arith.constant 0 : index
    %c0_2 = arith.constant 0 : index
    %0 = vector.load %arg2[%c0, %c0_0, %c0_1, %c0_2] : memref<1x1x20x40xf32, #tpu.memory_space<vmem>>, vector<1x1x20x40xf32>
    %1 = vector.shape_cast %0 : vector<1x1x20x40xf32> to vector<20x40xf32>
    %c0_3 = arith.constant 0 : index
    %c0_4 = arith.constant 0 : index
    %c0_5 = arith.constant 0 : index
    %2 = vector.load %arg3[%c0_3, %c0_4, %c0_5] : memref<1x25x32xf32, #tpu.memory_space<vmem>>, vector<1x25x32xf32>
    %3 = vector.shape_cast %2 : vector<1x25x32xf32> to vector<25x32xf32>
    %cst = arith.constant 0.000000e+00 : f32
    %4 = vector.broadcast %cst : f32 to vector<16x32xf32>
    %5 = vector.extract_strided_slice %1 {offsets = [0, 0], sizes = [16, 32], strides = [1, 1]} : vector<20x40xf32> to vector<16x32xf32>
    %6 = vector.extract_strided_slice %3 {offsets = [0, 0], sizes = [1, 32], strides = [1, 1]} : vector<25x32xf32> to vector<1x32xf32>
    %7 = vector.broadcast %6 : vector<1x32xf32> to vector<16x32xf32>
    %8 = arith.mulf %7, %5 : vector<16x32xf32>
    %9 = arith.addf %4, %8 : vector<16x32xf32>
    %10 = vector.extract_strided_slice %1 {offsets = [0, 2], sizes = [16, 32], strides = [1, 1]} : vector<20x40xf32> to vector<16x32xf32>
    %11 = vector.extract_strided_slice %3 {offsets = [1, 0], sizes = [1, 32], strides = [1, 1]} : vector<25x32xf32> to vector<1x32xf32>
    %12 = vector.broadcast %11 : vector<1x32xf32> to vector<16x32xf32>
    %13 = arith.mulf %12, %10 : vector<16x32xf32>
    %14 = arith.addf %9, %13 : vector<16x32xf32>
    %15 = vector.extract_strided_slice %1 {offsets = [0, 4], sizes = [16, 32], strides = [1, 1]} : vector<20x40xf32> to vector<16x32xf32>
    %16 = vector.extract_strided_slice %3 {offsets = [2, 0], sizes = [1, 32], strides = [1, 1]} : vector<25x32xf32> to vector<1x32xf32>
    %17 = vector.broadcast %16 : vector<1x32xf32> to vector<16x32xf32>
    %18 = arith.mulf %17, %15 : vector<16x32xf32>
    %19 = arith.addf %14, %18 : vector<16x32xf32>
    %20 = vector.extract_strided_slice %1 {offsets = [0, 6], sizes = [16, 32], strides = [1, 1]} : vector<20x40xf32> to vector<16x32xf32>
    %21 = vector.extract_strided_slice %3 {offsets = [3, 0], sizes = [1, 32], strides = [1, 1]} : vector<25x32xf32> to vector<1x32xf32>
    %22 = vector.broadcast %21 : vector<1x32xf32> to vector<16x32xf32>
    %23 = arith.mulf %22, %20 : vector<16x32xf32>
    %24 = arith.addf %19, %23 : vector<16x32xf32>
    %25 = vector.extract_strided_slice %1 {offsets = [0, 8], sizes = [16, 32], strides = [1, 1]} : vector<20x40xf32> to vector<16x32xf32>
    %26 = vector.extract_strided_slice %3 {offsets = [4, 0], sizes = [1, 32], strides = [1, 1]} : vector<25x32xf32> to vector<1x32xf32>
    %27 = vector.broadcast %26 : vector<1x32xf32> to vector<16x32xf32>
    %28 = arith.mulf %27, %25 : vector<16x32xf32>
    %29 = arith.addf %24, %28 : vector<16x32xf32>
    %30 = vector.extract_strided_slice %1 {offsets = [1, 0], sizes = [16, 32], strides = [1, 1]} : vector<20x40xf32> to vector<16x32xf32>
    %31 = vector.extract_strided_slice %3 {offsets = [5, 0], sizes = [1, 32], strides = [1, 1]} : vector<25x32xf32> to vector<1x32xf32>
    %32 = vector.broadcast %31 : vector<1x32xf32> to vector<16x32xf32>
    %33 = arith.mulf %32, %30 : vector<16x32xf32>
    %34 = arith.addf %29, %33 : vector<16x32xf32>
    %35 = vector.extract_strided_slice %1 {offsets = [1, 2], sizes = [16, 32], strides = [1, 1]} : vector<20x40xf32> to vector<16x32xf32>
    %36 = vector.extract_strided_slice %3 {offsets = [6, 0], sizes = [1, 32], strides = [1, 1]} : vector<25x32xf32> to vector<1x32xf32>
    %37 = vector.broadcast %36 : vector<1x32xf32> to vector<16x32xf32>
    %38 = arith.mulf %37, %35 : vector<16x32xf32>
    %39 = arith.addf %34, %38 : vector<16x32xf32>
    %40 = vector.extract_strided_slice %1 {offsets = [1, 4], sizes = [16, 32], strides = [1, 1]} : vector<20x40xf32> to vector<16x32xf32>
    %41 = vector.extract_strided_slice %3 {offsets = [7, 0], sizes = [1, 32], strides = [1, 1]} : vector<25x32xf32> to vector<1x32xf32>
    %42 = vector.broadcast %41 : vector<1x32xf32> to vector<16x32xf32>
    %43 = arith.mulf %42, %40 : vector<16x32xf32>
    %44 = arith.addf %39, %43 : vector<16x32xf32>
    %45 = vector.extract_strided_slice %1 {offsets = [1, 6], sizes = [16, 32], strides = [1, 1]} : vector<20x40xf32> to vector<16x32xf32>
    %46 = vector.extract_strided_slice %3 {offsets = [8, 0], sizes = [1, 32], strides = [1, 1]} : vector<25x32xf32> to vector<1x32xf32>
    %47 = vector.broadcast %46 : vector<1x32xf32> to vector<16x32xf32>
    %48 = arith.mulf %47, %45 : vector<16x32xf32>
    %49 = arith.addf %44, %48 : vector<16x32xf32>
    %50 = vector.extract_strided_slice %1 {offsets = [1, 8], sizes = [16, 32], strides = [1, 1]} : vector<20x40xf32> to vector<16x32xf32>
    %51 = vector.extract_strided_slice %3 {offsets = [9, 0], sizes = [1, 32], strides = [1, 1]} : vector<25x32xf32> to vector<1x32xf32>
    %52 = vector.broadcast %51 : vector<1x32xf32> to vector<16x32xf32>
    %53 = arith.mulf %52, %50 : vector<16x32xf32>
    %54 = arith.addf %49, %53 : vector<16x32xf32>
    %55 = vector.extract_strided_slice %1 {offsets = [2, 0], sizes = [16, 32], strides = [1, 1]} : vector<20x40xf32> to vector<16x32xf32>
    %56 = vector.extract_strided_slice %3 {offsets = [10, 0], sizes = [1, 32], strides = [1, 1]} : vector<25x32xf32> to vector<1x32xf32>
    %57 = vector.broadcast %56 : vector<1x32xf32> to vector<16x32xf32>
    %58 = arith.mulf %57, %55 : vector<16x32xf32>
    %59 = arith.addf %54, %58 : vector<16x32xf32>
    %60 = vector.extract_strided_slice %1 {offsets = [2, 2], sizes = [16, 32], strides = [1, 1]} : vector<20x40xf32> to vector<16x32xf32>
    %61 = vector.extract_strided_slice %3 {offsets = [11, 0], sizes = [1, 32], strides = [1, 1]} : vector<25x32xf32> to vector<1x32xf32>
    %62 = vector.broadcast %61 : vector<1x32xf32> to vector<16x32xf32>
    %63 = arith.mulf %62, %60 : vector<16x32xf32>
    %64 = arith.addf %59, %63 : vector<16x32xf32>
    %65 = vector.extract_strided_slice %1 {offsets = [2, 4], sizes = [16, 32], strides = [1, 1]} : vector<20x40xf32> to vector<16x32xf32>
    %66 = vector.extract_strided_slice %3 {offsets = [12, 0], sizes = [1, 32], strides = [1, 1]} : vector<25x32xf32> to vector<1x32xf32>
    %67 = vector.broadcast %66 : vector<1x32xf32> to vector<16x32xf32>
    %68 = arith.mulf %67, %65 : vector<16x32xf32>
    %69 = arith.addf %64, %68 : vector<16x32xf32>
    %70 = vector.extract_strided_slice %1 {offsets = [2, 6], sizes = [16, 32], strides = [1, 1]} : vector<20x40xf32> to vector<16x32xf32>
    %71 = vector.extract_strided_slice %3 {offsets = [13, 0], sizes = [1, 32], strides = [1, 1]} : vector<25x32xf32> to vector<1x32xf32>
    %72 = vector.broadcast %71 : vector<1x32xf32> to vector<16x32xf32>
    %73 = arith.mulf %72, %70 : vector<16x32xf32>
    %74 = arith.addf %69, %73 : vector<16x32xf32>
    %75 = vector.extract_strided_slice %1 {offsets = [2, 8], sizes = [16, 32], strides = [1, 1]} : vector<20x40xf32> to vector<16x32xf32>
    %76 = vector.extract_strided_slice %3 {offsets = [14, 0], sizes = [1, 32], strides = [1, 1]} : vector<25x32xf32> to vector<1x32xf32>
    %77 = vector.broadcast %76 : vector<1x32xf32> to vector<16x32xf32>
    %78 = arith.mulf %77, %75 : vector<16x32xf32>
    %79 = arith.addf %74, %78 : vector<16x32xf32>
    %80 = vector.extract_strided_slice %1 {offsets = [3, 0], sizes = [16, 32], strides = [1, 1]} : vector<20x40xf32> to vector<16x32xf32>
    %81 = vector.extract_strided_slice %3 {offsets = [15, 0], sizes = [1, 32], strides = [1, 1]} : vector<25x32xf32> to vector<1x32xf32>
    %82 = vector.broadcast %81 : vector<1x32xf32> to vector<16x32xf32>
    %83 = arith.mulf %82, %80 : vector<16x32xf32>
    %84 = arith.addf %79, %83 : vector<16x32xf32>
    %85 = vector.extract_strided_slice %1 {offsets = [3, 2], sizes = [16, 32], strides = [1, 1]} : vector<20x40xf32> to vector<16x32xf32>
    %86 = vector.extract_strided_slice %3 {offsets = [16, 0], sizes = [1, 32], strides = [1, 1]} : vector<25x32xf32> to vector<1x32xf32>
    %87 = vector.broadcast %86 : vector<1x32xf32> to vector<16x32xf32>
    %88 = arith.mulf %87, %85 : vector<16x32xf32>
    %89 = arith.addf %84, %88 : vector<16x32xf32>
    %90 = vector.extract_strided_slice %1 {offsets = [3, 4], sizes = [16, 32], strides = [1, 1]} : vector<20x40xf32> to vector<16x32xf32>
    %91 = vector.extract_strided_slice %3 {offsets = [17, 0], sizes = [1, 32], strides = [1, 1]} : vector<25x32xf32> to vector<1x32xf32>
    %92 = vector.broadcast %91 : vector<1x32xf32> to vector<16x32xf32>
    %93 = arith.mulf %92, %90 : vector<16x32xf32>
    %94 = arith.addf %89, %93 : vector<16x32xf32>
    %95 = vector.extract_strided_slice %1 {offsets = [3, 6], sizes = [16, 32], strides = [1, 1]} : vector<20x40xf32> to vector<16x32xf32>
    %96 = vector.extract_strided_slice %3 {offsets = [18, 0], sizes = [1, 32], strides = [1, 1]} : vector<25x32xf32> to vector<1x32xf32>
    %97 = vector.broadcast %96 : vector<1x32xf32> to vector<16x32xf32>
    %98 = arith.mulf %97, %95 : vector<16x32xf32>
    %99 = arith.addf %94, %98 : vector<16x32xf32>
    %100 = vector.extract_strided_slice %1 {offsets = [3, 8], sizes = [16, 32], strides = [1, 1]} : vector<20x40xf32> to vector<16x32xf32>
    %101 = vector.extract_strided_slice %3 {offsets = [19, 0], sizes = [1, 32], strides = [1, 1]} : vector<25x32xf32> to vector<1x32xf32>
    %102 = vector.broadcast %101 : vector<1x32xf32> to vector<16x32xf32>
    %103 = arith.mulf %102, %100 : vector<16x32xf32>
    %104 = arith.addf %99, %103 : vector<16x32xf32>
    %105 = vector.extract_strided_slice %1 {offsets = [4, 0], sizes = [16, 32], strides = [1, 1]} : vector<20x40xf32> to vector<16x32xf32>
    %106 = vector.extract_strided_slice %3 {offsets = [20, 0], sizes = [1, 32], strides = [1, 1]} : vector<25x32xf32> to vector<1x32xf32>
    %107 = vector.broadcast %106 : vector<1x32xf32> to vector<16x32xf32>
    %108 = arith.mulf %107, %105 : vector<16x32xf32>
    %109 = arith.addf %104, %108 : vector<16x32xf32>
    %110 = vector.extract_strided_slice %1 {offsets = [4, 2], sizes = [16, 32], strides = [1, 1]} : vector<20x40xf32> to vector<16x32xf32>
    %111 = vector.extract_strided_slice %3 {offsets = [21, 0], sizes = [1, 32], strides = [1, 1]} : vector<25x32xf32> to vector<1x32xf32>
    %112 = vector.broadcast %111 : vector<1x32xf32> to vector<16x32xf32>
    %113 = arith.mulf %112, %110 : vector<16x32xf32>
    %114 = arith.addf %109, %113 : vector<16x32xf32>
    %115 = vector.extract_strided_slice %1 {offsets = [4, 4], sizes = [16, 32], strides = [1, 1]} : vector<20x40xf32> to vector<16x32xf32>
    %116 = vector.extract_strided_slice %3 {offsets = [22, 0], sizes = [1, 32], strides = [1, 1]} : vector<25x32xf32> to vector<1x32xf32>
    %117 = vector.broadcast %116 : vector<1x32xf32> to vector<16x32xf32>
    %118 = arith.mulf %117, %115 : vector<16x32xf32>
    %119 = arith.addf %114, %118 : vector<16x32xf32>
    %120 = vector.extract_strided_slice %1 {offsets = [4, 6], sizes = [16, 32], strides = [1, 1]} : vector<20x40xf32> to vector<16x32xf32>
    %121 = vector.extract_strided_slice %3 {offsets = [23, 0], sizes = [1, 32], strides = [1, 1]} : vector<25x32xf32> to vector<1x32xf32>
    %122 = vector.broadcast %121 : vector<1x32xf32> to vector<16x32xf32>
    %123 = arith.mulf %122, %120 : vector<16x32xf32>
    %124 = arith.addf %119, %123 : vector<16x32xf32>
    %125 = vector.extract_strided_slice %1 {offsets = [4, 8], sizes = [16, 32], strides = [1, 1]} : vector<20x40xf32> to vector<16x32xf32>
    %126 = vector.extract_strided_slice %3 {offsets = [24, 0], sizes = [1, 32], strides = [1, 1]} : vector<25x32xf32> to vector<1x32xf32>
    %127 = vector.broadcast %126 : vector<1x32xf32> to vector<16x32xf32>
    %128 = arith.mulf %127, %125 : vector<16x32xf32>
    %129 = arith.addf %124, %128 : vector<16x32xf32>
    %cst_6 = arith.constant dense<0.000000e+00> : vector<32xf32>
    %130 = vector.multi_reduction <add>, %129, %cst_6 [0] : vector<16x32xf32> to vector<32xf32>
    %131 = vector.shape_cast %130 : vector<32xf32> to vector<1x32xf32>
    %132 = arith.mulf %129, %129 : vector<16x32xf32>
    %cst_7 = arith.constant dense<0.000000e+00> : vector<32xf32>
    %133 = vector.multi_reduction <add>, %132, %cst_7 [0] : vector<16x32xf32> to vector<32xf32>
    %134 = vector.shape_cast %133 : vector<32xf32> to vector<1x32xf32>
    %135 = tpu.concatenate %131, %134 in 0 : vector<1x32xf32>, vector<1x32xf32> -> vector<2x32xf32>
    %c0_8 = arith.constant 0 : index
    %c0_9 = arith.constant 0 : index
    %136 = vector.load %arg7[%c0_8, %c0_9] : memref<32x2xf32, #tpu.memory_space<vmem>>, vector<32x2xf32>
    %cst_10 = arith.constant dense<0.000000e+00> : vector<2x2xf32>
    %137 = tpu.matmul %135, %136, %cst_10 {dimension_numbers = #tpu.dot_dimension_numbers<[1], [0], [0], [1], [0, 0, 1, 1], [], []>, precision = #tpu.contract_precision<fp32>} : vector<2x32xf32>, vector<32x2xf32>, vector<2x2xf32> -> vector<2x2xf32>
    %138 = vector.extract_strided_slice %137 {offsets = [0, 0], sizes = [1, 2], strides = [1, 1]} : vector<2x2xf32> to vector<1x2xf32>
    %cst_11 = arith.constant 3.906250e-03 : f32
    %139 = vector.broadcast %cst_11 : f32 to vector<1x2xf32>
    %140 = arith.mulf %138, %139 : vector<1x2xf32>
    %141 = vector.extract_strided_slice %137 {offsets = [1, 0], sizes = [1, 2], strides = [1, 1]} : vector<2x2xf32> to vector<1x2xf32>
    %cst_12 = arith.constant 3.906250e-03 : f32
    %142 = vector.broadcast %cst_12 : f32 to vector<1x2xf32>
    %143 = arith.mulf %141, %142 : vector<1x2xf32>
    %144 = arith.mulf %140, %140 : vector<1x2xf32>
    %145 = arith.subf %143, %144 : vector<1x2xf32>
    %cst_13 = arith.constant 9.99999974E-6 : f32
    %146 = vector.broadcast %cst_13 : f32 to vector<1x2xf32>
    %147 = arith.addf %145, %146 : vector<1x2xf32>
    %148 = math.rsqrt %147 : vector<1x2xf32>
    %c0_14 = arith.constant 0 : index
    %c0_15 = arith.constant 0 : index
    %c0_16 = arith.constant 0 : index
    %149 = vector.load %arg4[%c0_14, %c0_15, %c0_16] : memref<1x1x2xf32, #tpu.memory_space<vmem>>, vector<1x1x2xf32>
    %150 = vector.shape_cast %149 : vector<1x1x2xf32> to vector<1x2xf32>
    %151 = arith.mulf %150, %148 : vector<1x2xf32>
    %c0_17 = arith.constant 0 : index
    %c0_18 = arith.constant 0 : index
    %c0_19 = arith.constant 0 : index
    %152 = vector.load %arg5[%c0_17, %c0_18, %c0_19] : memref<1x1x2xf32, #tpu.memory_space<vmem>>, vector<1x1x2xf32>
    %153 = vector.shape_cast %152 : vector<1x1x2xf32> to vector<1x2xf32>
    %154 = arith.mulf %140, %151 : vector<1x2xf32>
    %155 = arith.subf %153, %154 : vector<1x2xf32>
    %156 = tpu.concatenate %151, %155 in 0 : vector<1x2xf32>, vector<1x2xf32> -> vector<2x2xf32>
    %c0_20 = arith.constant 0 : index
    %c0_21 = arith.constant 0 : index
    %157 = vector.load %arg8[%c0_20, %c0_21] : memref<2x32xf32, #tpu.memory_space<vmem>>, vector<2x32xf32>
    %cst_22 = arith.constant dense<0.000000e+00> : vector<2x32xf32>
    %158 = tpu.matmul %156, %157, %cst_22 {dimension_numbers = #tpu.dot_dimension_numbers<[1], [0], [0], [1], [0, 0, 1, 1], [], []>, precision = #tpu.contract_precision<fp32>} : vector<2x2xf32>, vector<2x32xf32>, vector<2x32xf32> -> vector<2x32xf32>
    %159 = vector.extract_strided_slice %158 {offsets = [0, 0], sizes = [1, 32], strides = [1, 1]} : vector<2x32xf32> to vector<1x32xf32>
    %160 = vector.broadcast %159 : vector<1x32xf32> to vector<16x32xf32>
    %161 = arith.mulf %129, %160 : vector<16x32xf32>
    %162 = vector.extract_strided_slice %158 {offsets = [1, 0], sizes = [1, 32], strides = [1, 1]} : vector<2x32xf32> to vector<1x32xf32>
    %163 = vector.broadcast %162 : vector<1x32xf32> to vector<16x32xf32>
    %164 = arith.addf %161, %163 : vector<16x32xf32>
    %cst_23 = arith.constant 0.000000e+00 : f32
    %165 = vector.broadcast %cst_23 : f32 to vector<16x32xf32>
    %166 = arith.subf %165, %164 : vector<16x32xf32>
    %167 = math.exp %166 : vector<16x32xf32>
    %cst_24 = arith.constant 1.000000e+00 : f32
    %168 = vector.broadcast %cst_24 : f32 to vector<16x32xf32>
    %169 = arith.addf %168, %167 : vector<16x32xf32>
    %cst_25 = arith.constant 1.000000e+00 : f32
    %170 = vector.broadcast %cst_25 : f32 to vector<16x32xf32>
    %171 = arith.divf %170, %169 : vector<16x32xf32>
    %cst_26 = arith.constant 1.200000e+01 : f32
    %172 = vector.broadcast %cst_26 : f32 to vector<16x32xf32>
    %173 = arith.mulf %172, %171 : vector<16x32xf32>
    %174 = math.exp %173 : vector<16x32xf32>
    %175 = vector.extract_strided_slice %1 {offsets = [2, 4], sizes = [16, 32], strides = [1, 1]} : vector<20x40xf32> to vector<16x32xf32>
    %176 = arith.mulf %175, %174 : vector<16x32xf32>
    %c0_27 = arith.constant 0 : index
    %c0_28 = arith.constant 0 : index
    %177 = vector.load %arg6[%c0_27, %c0_28] : memref<8x16xf32, #tpu.memory_space<vmem>>, vector<8x16xf32>
    %c0_29 = arith.constant 0 : index
    %c0_30 = arith.constant 0 : index
    %178 = vector.load %arg9[%c0_29, %c0_30] : memref<32x16xf32, #tpu.memory_space<vmem>>, vector<32x16xf32>
    %cst_31 = arith.constant dense<0.000000e+00> : vector<8x32xf32>
    %179 = tpu.matmul %177, %176, %cst_31 {dimension_numbers = #tpu.dot_dimension_numbers<[1], [0], [0], [1], [0, 0, 1, 1], [], []>, precision = #tpu.contract_precision<fp32>} : vector<8x16xf32>, vector<16x32xf32>, vector<8x32xf32> -> vector<8x32xf32>
    %cst_32 = arith.constant dense<0.000000e+00> : vector<8x16xf32>
    %180 = tpu.matmul %179, %178, %cst_32 {dimension_numbers = #tpu.dot_dimension_numbers<[1], [0], [0], [1], [0, 0, 1, 1], [], []>, precision = #tpu.contract_precision<fp32>} : vector<8x32xf32>, vector<32x16xf32>, vector<8x16xf32> -> vector<8x16xf32>
    %cst_33 = arith.constant dense<0.000000e+00> : vector<8x32xf32>
    %181 = tpu.matmul %177, %174, %cst_33 {dimension_numbers = #tpu.dot_dimension_numbers<[1], [0], [0], [1], [0, 0, 1, 1], [], []>, precision = #tpu.contract_precision<fp32>} : vector<8x16xf32>, vector<16x32xf32>, vector<8x32xf32> -> vector<8x32xf32>
    %cst_34 = arith.constant dense<0.000000e+00> : vector<8x16xf32>
    %182 = tpu.matmul %181, %178, %cst_34 {dimension_numbers = #tpu.dot_dimension_numbers<[1], [0], [0], [1], [0, 0, 1, 1], [], []>, precision = #tpu.contract_precision<fp32>} : vector<8x32xf32>, vector<32x16xf32>, vector<8x16xf32> -> vector<8x16xf32>
    %183 = arith.divf %180, %182 : vector<8x16xf32>
    %c0_35 = arith.constant 0 : index
    %c0_36 = arith.constant 0 : index
    %c0_37 = arith.constant 0 : index
    %c0_38 = arith.constant 0 : index
    %184 = vector.load %arg10[%c0_35, %c0_36, %c0_37, %c0_38] : memref<1x1x8x16xf32, #tpu.memory_space<vmem>>, vector<1x1x8x16xf32>
    %185 = vector.shape_cast %184 : vector<1x1x8x16xf32> to vector<8x16xf32>
    %186 = vector.shape_cast %183 : vector<8x16xf32> to vector<1x1x8x16xf32>
    tpu.vector_store %arg10[%c0_35, %c0_36, %c0_37, %c0_38], %186 {strides = array<i32>} : memref<1x1x8x16xf32, #tpu.memory_space<vmem>>, vector<1x1x8x16xf32>,
    return
  }
  func.func @transform_0(%arg0: i32, %arg1: i32) -> (i32, i32, i32, i32) {
    %c0_i32 = arith.constant 0 : i32
    %c0_i32_0 = arith.constant 0 : i32
    %c0_i32_1 = arith.constant 0 : i32
    return %arg0, %arg1, %c0_i32, %c0_i32_0 : i32, i32, i32, i32
  }
  func.func @transform_1(%arg0: i32, %arg1: i32) -> (i32, i32, i32) {
    %c0_i32 = arith.constant 0 : i32
    %c0_i32_0 = arith.constant 0 : i32
    %c0_i32_1 = arith.constant 0 : i32
    return %arg1, %c0_i32, %c0_i32_0 : i32, i32, i32
  }
  func.func @transform_2(%arg0: i32, %arg1: i32) -> (i32, i32, i32) {
    %c0_i32 = arith.constant 0 : i32
    %c0_i32_0 = arith.constant 0 : i32
    %c0_i32_1 = arith.constant 0 : i32
    return %arg1, %c0_i32, %c0_i32_0 : i32, i32, i32
  }
  func.func @transform_3(%arg0: i32, %arg1: i32) -> (i32, i32, i32) {
    %c0_i32 = arith.constant 0 : i32
    %c0_i32_0 = arith.constant 0 : i32
    %c0_i32_1 = arith.constant 0 : i32
    return %arg1, %c0_i32, %c0_i32_0 : i32, i32, i32
  }
  func.func @transform_4(%arg0: i32, %arg1: i32) -> (i32, i32) {
    %c0_i32 = arith.constant 0 : i32
    %c0_i32_0 = arith.constant 0 : i32
    %c0_i32_1 = arith.constant 0 : i32
    return %c0_i32, %c0_i32_0 : i32, i32
  }
  func.func @transform_5(%arg0: i32, %arg1: i32) -> (i32, i32) {
    %c0_i32 = arith.constant 0 : i32
    %c0_i32_0 = arith.constant 0 : i32
    %c0_i32_1 = arith.constant 0 : i32
    return %c0_i32, %c0_i32_0 : i32, i32
  }
  func.func @transform_6(%arg0: i32, %arg1: i32) -> (i32, i32) {
    %c0_i32 = arith.constant 0 : i32
    %c0_i32_0 = arith.constant 0 : i32
    %c0_i32_1 = arith.constant 0 : i32
    return %c0_i32, %c0_i32_0 : i32, i32
  }
  func.func @transform_7(%arg0: i32, %arg1: i32) -> (i32, i32) {
    %c0_i32 = arith.constant 0 : i32
    %c0_i32_0 = arith.constant 0 : i32
    %c0_i32_1 = arith.constant 0 : i32
    return %c0_i32, %c0_i32_0 : i32, i32
  }
  func.func @transform_8(%arg0: i32, %arg1: i32) -> (i32, i32, i32, i32) {
    %c0_i32 = arith.constant 0 : i32
    %c0_i32_0 = arith.constant 0 : i32
    %c0_i32_1 = arith.constant 0 : i32
    return %arg0, %arg1, %c0_i32, %c0_i32_0 : i32, i32, i32, i32
  }
}

</mosaic_0001>

<bundles_post_ra>
// kernel: tpu_custom_call.1
= control target key start
LH: loop header
LB: loop body
LE: loop exit
PB: predicated region body
PF: predicated region fallthrough
CT: control target
= control target key end

     0   :  { %s6313_s0 = inlined_call_operand.hbm [shape: f32[2,2,20,40], index: 0, kind: input, shape index: {}]   ;;  %s6314_s1 = inlined_call_operand.hbm [shape: f32[2,25,32], index: 1, kind: input, shape index: {}]   ;;  %s6315_s2 = inlined_call_operand.hbm [shape: f32[2,1,2], index: 2, kind: input, shape index: {}]   ;;  %s6316_s3 = inlined_call_operand.hbm [shape: f32[2,1,2], index: 3, kind: input, shape index: {}]   ;;  %s6317_s4 = inlined_call_operand.hbm [shape: f32[8,16], index: 4, kind: input, shape index: {}]   ;;  %s6318_s5 = inlined_call_operand.hbm [shape: f32[32,2], index: 5, kind: input, shape index: {}]   ;;  %s6319_s6 = inlined_call_operand.hbm [shape: f32[2,32], index: 6, kind: input, shape index: {}]   ;;  %s6320_s7 = inlined_call_operand.hbm [shape: f32[32,16], index: 7, kind: input, shape index: {}]   ;;  %s6321_s8 = inlined_call_operand.hbm [shape: f32[2,2,8,16], index: 8, kind: output, shape index: {}]  }
   0x1   :  { %6355 = sst [smem:[#allocation35_spill]] %s6314_s1 }
   0x2   :  { %6356 = sst [smem:[#allocation36_spill]] %s6315_s2 }
   0x3   :  { %6357 = sst [smem:[#allocation37_spill]] %s6316_s3 }
   0x4   :  { %6358 = sst [smem:[#allocation38_spill]] %s6317_s4 }
   0x5   :  { %6359 = sst [smem:[#allocation39_spill]] %s6318_s5 }
   0x6   :  { %6360 = sst [smem:[#allocation40_spill]] %s6319_s6 }
   0x7   :  { %6361 = sst [smem:[#allocation41_spill]] %s6320_s7 }
   0x8   :  { %6362 = sst [smem:[#allocation42_spill]] %s6321_s8 }
   0x9   :  { %13 = vsyncpa [#allocation3], 0 }
   0xa   :  { %15 = vsyncpa [#allocation3 + $0x1], 0 }
   0xb   :  { %16 = vsyncpa [#allocation6], 0 }
   0xc   :  { %18 = vsyncpa [#allocation6 + $0x1], 0 }
   0xd   :  { %19 = vsyncpa [#allocation9], 0 }
   0xe   :  { %21 = vsyncpa [#allocation9 + $0x1], 0 }
   0xf   :  { %22 = vsyncpa [#allocation12], 0 }
  0x10   :  { %23 = vsyncpa [#allocation15], 0 }
  0x11   :  { %24 = vsyncpa [#allocation4], 0 }
  0x12   :  { %26 = vsyncpa [#allocation4 + $0x1], 0  ;;  %s5386_s27 = smov 0   ;;  %s5388_s28 = smov 0  }
  0x13   :  { %s5390_s29 = smov 0   ;;  %s5392_s30 = smov 0  }
  0x14   :  { %s5394_s9 = smov 0   ;;  %s5396_s10 = smov 0  }
  0x15   :  { %s5398_s11 = smov 0   ;;  %s5400_s12 = smov 0  }
  0x16   :  { %s5402_s13 = smov 0   ;;  %s5404_s14 = smov 0  }
  0x17   :  { %s5406_s15 = smov 0  }
  0x18 LB: > { %6363 = sst [smem:[#allocation24_spill]] %s5283_s28  ;;  %s5442_s16 = sadd.s32 4294967295, %s5319_s15   ;;  %s5319_s15 = sphi %s5406_s15, %s32_s15   ;;  %s5315_s14 = sphi %s5404_s14, %s6438_s14   ;;  %s5311_s13 = sphi %s5402_s13, %s6437_s13   ;;  %s5307_s12 = sphi %s5400_s12, %s6436_s12   ;;  %s5303_s11 = sphi %s5398_s11, %s6435_s11   ;;  %s5299_s10 = sphi %s5396_s10, %s6434_s10   ;;  %s5295_s9 = sphi %s5394_s9, %s6433_s9   ;;  %s5291_s30 = sphi %s5392_s30, %s6432_s30   ;;  %s5287_s29 = sphi %s5390_s29, %s6429_s29   ;;  %s5283_s28 = sphi %s5388_s28, %s6428_s28   ;;  %s5279_s27 = sphi %s5386_s27, %s6427_s27  }
  0x19   : > { %6364 = sst [smem:[#allocation25_spill]] %s5287_s29  ;;  %p4075_p0 = scmp.ge.s32.totalorder %s5319_s15, 1 }
  0x1a   : > { %6365 = sst [smem:[#allocation26_spill]] %s5303_s11  ;;  %p6323_p1 = scmp.eq.s32.totalorder %s5442_s16, 0 }
  0x1b   : > { %6366 = sst [smem:[#allocation27_spill]] %s5307_s12  ;;  %p267_p3 = scmp.lt.s32.totalorder %s5319_s15, 5 }
  0x1c   : > { %s5321_s18 = smov [#allocation10]   ;;  %s5322_s20 = smov [#allocation11]  }
  0x1d   : > { %p5448_p4 = pnand %p4075_p0, %p267_p3  ;;  %s280_s19 = sshll.u32 %s5321_s18, 4  ;;  %s281_s19 = int_to_ptr.vmem [resolvable:$true] %s280_s19 }
  0x1e   : > { %s290_s21 = sshll.u32 %s5322_s20, 4  ;;  %s6370_s4 = sld [smem:[#allocation38_spill]]  ;;  %s5454_s21 = int_to_ptr.vmem [resolvable:$true] %s290_s21 }
  0x1f   : > { %s6367_s17 = scalar_select %p5448_p4, 1, 0 }
  0x20   : > { %p4783_p5 = pneg %p5448_p4 }
  0x21   : > { %6368 = sst [smem:[#allocation28_spill]] %s6367_s17 }
  0x22   : > { %p5458_p6 = pnand %p4783_p5, %p6323_p1 }
  0x24   : > { %s6369_s22 = scalar_select %p5458_p6, 1, 0 }
  0x25   : > { %s4945_s25 = scalar_lea.hbm %s6370_s4, 128  ;;  %p5470_p8 = pneg %p5458_p6 }
  0x26   : > { %p4946_p7 = scmp.ne.s32.totalorder %s6370_s4, %s4945_s25  ;;  %p4952_p11 = scmp.lt.u32.totalorder %s4945_s25, %s6370_s4 }
  0x27   : > { %s6371_s18 = scalar_select %p5470_p8, 1, 0 }
  0x28   : > { %p4948_p9 = pnand %p5470_p8, %p4946_p7 }
  0x2a   : > { %p4949_p10 = pneg %p4948_p9 }
  0x2c   : > { %p4954_p12 = pnand %p4952_p11, %p4949_p10 }
  0x2e   : > { %4957 = shalt.err (!%p4954_p12)
}
  0x2f   : > { %s4958_s23 = scalar_lea.vmem %s281_s19, 128  ;;  %p4966_p5 = scmp.lt.s32.totalorder %s281_s19, %s281_s19 }
  0x30   : > { %p4959_p13 = scmp.ne.s32.totalorder %s281_s19, %s4958_s23  ;;  %p4967_p2 = scmp.lt.s32.totalorder %s4958_s23, %s4958_s23 }
  0x32   : > { %p4961_p0 = pnand %p4959_p13, %p5470_p8  ;;  %p4968_p1 = por %p4967_p2, %p4966_p5 }
  0x34   : > { %p4962_p3 = pneg %p4961_p0 }
  0x36   : > { %p4969_p4 = pnand %p4968_p1, %p4962_p3 }
  0x38   : > { %4972 = shalt.err (!%p4969_p4)
}
  0x39   : > { %4786 = dma.hbm_to_vmem [thread:$0]  (!%p5458_p6), %s6370_s4, 128, %s281_s19, [#allocation9]  }
  0x3a   : > { %s6372_s5 = sld [smem:[#allocation39_spill]] }
  0x40   : > { %s4973_s26 = scalar_lea.hbm %s6372_s5, 512 }
  0x41   : > { %p4974_p7 = scmp.ne.s32.totalorder %s6372_s5, %s4973_s26  ;;  %p4980_p1 = scmp.lt.u32.totalorder %s4973_s26, %s6372_s5 }
  0x43   : > { %p4976_p9 = pnand %p4974_p7, %p5470_p8 }
  0x45   : > { %p4977_p2 = pneg %p4976_p9 }
  0x47   : > { %p4982_p4 = pnand %p4980_p1, %p4977_p2 }
  0x49   : > { %4985 = shalt.err (!%p4982_p4)
}
  0x4a   : > { %s4986_s19 = scalar_lea.vmem %s5454_s21, 512  ;;  %p4994_p13 = scmp.lt.s32.totalorder %s5454_s21, %s5454_s21 }
  0x4b   : > { %p4987_p10 = scmp.ne.s32.totalorder %s5454_s21, %s4986_s19  ;;  %p4995_p0 = scmp.lt.s32.totalorder %s4986_s19, %s4986_s19 }
  0x4d   : > { %p4989_p11 = pnand %p4987_p10, %p5470_p8  ;;  %p4996_p3 = por %p4995_p0, %p4994_p13 }
  0x4f   : > { %p4990_p12 = pneg %p4989_p11 }
  0x51   : > { %p4997_p5 = pnand %p4996_p3, %p4990_p12 }
  0x53   : > { %5000 = shalt.err (!%p4997_p5)
}
  0x54   : > { %s6326_s12 = smov 128   ;;  %s6328_s17 = smov 8  }
  0x55   : > { %4789 = dma.hbm_to_vmem [thread:$0]  (!%p5458_p6), %s6372_s5, 512, %s5454_s21, [#allocation12], %s6326_s12, %s6326_s12, %s6328_s17  }
  0x56   : > { %s41_s11 = sadd.s32 1, %s5311_s13  ;;  %p6336_p9 = scmp.eq.s32.totalorder %s5319_s15, 0 }
  0x57   : > { %p5513_p7 = scmp.ge.s32.totalorder %s41_s11, 2  ;;  %s79_s26 = sadd.s32 1, %s5287_s29 }
  0x58   : > { %p86_p2 = scmp.ne.s32.totalorder %s5287_s29, %s5283_s28  ;;  %p92_p4 = scmp.ne.s32.totalorder %s5283_s28, %s5279_s27 }
  0x59   : > { %s6373_s25 = scalar_select %p5513_p7, 1, 0 }
  0x5a   : > { %s6440_s11 = smov (%p5513_p7, %s41_s11), 0  ;;  %p5527_p1 = por %p86_p2, %p6336_p9 }
  0x5b   : > { %6374 = sst [smem:[#allocation29_spill]] %s6440_s11  ;;  %s5535_s21 = ssub.s32 %s5311_s13, %s6440_s11 }
  0x5c   : > { %p6335_p10 = scmp.lt.s32.totalorder %s5319_s15, 4  ;;  %p77_p11 = scmp.eq.s32.totalorder %s5535_s21, 0 }
  0x5d   : > { %p6376_p12 = scmp.eq.s32.totalorder %s5442_s16, 0  ;;  %s5547_s8 = sand.u32 1, %s5287_s29  }
  0x5e   : > { %s5550_s24 = scalar_select %p77_p11, %s5287_s29, %s79_s26  }
  0x5f   : > { %p5541_p13 = por %p92_p4, %p6376_p12  ;;  %s4082_s12 = sshll.u32 %s5547_s8, 5 }
  0x60   : > { %6379 = sst [smem:[#allocation31_spill]] %s5550_s24  ;;  %s4100_s17 = sshll.u32 %s5311_s13, 9 }
  0x61   : > { %s6377_s23 = scalar_select %p5541_p13, 1, 0 }
  0x62   : > { %s6380_s1 = sld [smem:[#allocation35_spill]]  ;;  %s355_s11 = scalar_lea.vmem [#allocation5], %s4082_s12 }
  0x63   : > { %6378 = sst [smem:[#allocation30_spill]] %s6377_s23  ;;  %s362_s28 = sshll.u32 %s355_s11, 4  ;;  %s5559_s28 = int_to_ptr.vmem [resolvable:$true] %s362_s28 }
  0x64   : > { %p5565_p0 = pnand %p6335_p10, %p5527_p1  ;;  %s5325_s19 = smov [#allocation13]  }
  0x65   : > { %s5569_s24 = sshll.u32 %s5325_s19, 4  ;;  %s6383_s4 = sand.u32 1, %s5319_s15   ;;  %s305_s24 = int_to_ptr.vmem [resolvable:$true] %s5569_s24 }
  0x66   : > { %s6381_s26 = scalar_select %p5565_p0, 1, 0 }
  0x67   : > { %p5579_p5 = pneg %p5565_p0 }
  0x68   : > { %s5557_s5 = scalar_lea.hbm %s6380_s1, %s4100_s17  ;;  %6382 = sst [smem:[#allocation32_spill]] %s6381_s26 }
  0x69   : > { %s5573_s17 = scalar_lea.sflag [#allocation6], %s6383_s4  ;;  %s5001_s27 = scalar_lea.hbm %s5557_s5, 512 }
  0x6a   : > { %p5002_p3 = scmp.ne.s32.totalorder %s5557_s5, %s5001_s27  ;;  %s5006_s29 = scalar_lea.hbm %s6380_s1, 1024 }
  0x6b   : > { %s6384_s12 = scalar_select %p5579_p5, 1, 0 }
  0x6c   : > { %p5004_p2 = pnand %p5579_p5, %p5002_p3  ;;  %p5007_p4 = scmp.lt.u32.totalorder %s5557_s5, %s6380_s1 }
  0x6d   : > { %p5008_p11 = scmp.lt.u32.totalorder %s5006_s29, %s5001_s27  ;;  %p5010_p10 = scmp.lt.u32.totalorder %s5001_s27, %s5557_s5 }
  0x6e   : > { %p5005_p1 = pneg %p5004_p2 }
  0x6f   : > { %p5009_p12 = por %p5008_p11, %p5007_p4 }
  0x71   : > { %p5011_p9 = por %p5010_p10, %p5009_p12 }
  0x73   : > { %p5012_p13 = pnand %p5011_p9, %p5005_p1 }
  0x75   : > { %5015 = shalt.err (!%p5012_p13)
}
  0x76   : > { %s5016_s4 = scalar_lea.vmem %s5559_s28, 512  ;;  %s5326_s11 = smov [#allocation5]  }
  0x77   : > { %p5017_p3 = scmp.ne.s32.totalorder %s5559_s28, %s5016_s4  ;;  %s5021_s20 = sshll.u32 %s5326_s11, 4  ;;  %s5022_s20 = int_to_ptr.vmem [resolvable:$false] %s5021_s20 }
  0x78   : > { %s5023_s23 = scalar_lea.vmem %s5022_s20, 1024  ;;  %p5024_p6 = scmp.lt.s32.totalorder %s5559_s28, %s5022_s20 }
  0x79   : > { %p5019_p2 = pnand %p5017_p3, %p5579_p5  ;;  %p5025_p8 = scmp.lt.s32.totalorder %s5023_s23, %s5016_s4 }
  0x7b   : > { %p5020_p7 = pneg %p5019_p2  ;;  %p5026_p4 = por %p5025_p8, %p5024_p6 }
  0x7d   : > { %p5027_p11 = pnand %p5026_p4, %p5020_p7 }
  0x7f   : > { %5030 = shalt.err (!%p5027_p11)
}
  0x80   : > { %s6385_s29 = smov 8   ;;  %s6386_s27 = smov 128  }
  0x81   : > { %4802 = dma.hbm_to_vmem [thread:$0]  (!%p5565_p0), %s5557_s5, 512, %s5559_s28, %s5573_s17, %s6386_s27, %s6386_s27, %s6385_s29  }
  0x82   : > { %s5327_s19 = smov [#allocation14]   ;;  %s6387_s6 = sld [smem:[#allocation40_spill]] }
  0x83   : > { %s314_s11 = sshll.u32 %s5327_s19, 4  ;;  %p6388_p8 = scmp.ne.s32.totalorder %s6371_s18, 0  ;;  %s315_s11 = int_to_ptr.vmem [resolvable:$true] %s314_s11 }
  0x88   : > { %s5031_s4 = scalar_lea.hbm %s6387_s6, 32 }
  0x89   : > { %p5032_p6 = scmp.ne.s32.totalorder %s6387_s6, %s5031_s4  ;;  %p5038_p10 = scmp.lt.u32.totalorder %s5031_s4, %s6387_s6 }
  0x8b   : > { %p5034_p7 = pnand %p5032_p6, %p6388_p8 }
  0x8d   : > { %p5035_p9 = pneg %p5034_p7 }
  0x8f   : > { %p5040_p13 = pnand %p5038_p10, %p5035_p9 }
  0x91   : > { %5043 = shalt.err (!%p5040_p13)
}
  0x92   : > { %s5044_s5 = scalar_lea.vmem %s305_s24, 32  ;;  %p5052_p2 = scmp.lt.s32.totalorder %s305_s24, %s305_s24 }
  0x93   : > { %p5045_p1 = scmp.ne.s32.totalorder %s305_s24, %s5044_s5  ;;  %p5053_p4 = scmp.lt.s32.totalorder %s5044_s5, %s5044_s5 }
  0x95   : > { %p5047_p12 = pnand %p5045_p1, %p6388_p8  ;;  %p5054_p11 = por %p5053_p4, %p5052_p2 }
  0x97   : > { %p5048_p3 = pneg %p5047_p12 }
  0x99   : > { %p5055_p0 = pnand %p5054_p11, %p5048_p3 }
  0x9b   : > { %5058 = shalt.err (!%p5055_p0)
}
  0x9c   : > { %p6389_p6 = scmp.ne.s32.totalorder %s6369_s22, 0  ;;  %s6390_s7 = sld [smem:[#allocation41_spill]] }
  0x9e   : > { %4792 = dma.hbm_to_vmem [thread:$0]  (!%p6389_p6), %s6387_s6, 32, %s305_s24, [#allocation12]  }
  0xa2   : > { %s5059_s26 = scalar_lea.hbm %s6390_s7, 512 }
  0xa3   : > { %p5060_p7 = scmp.ne.s32.totalorder %s6390_s7, %s5059_s26  ;;  %p5066_p0 = scmp.lt.u32.totalorder %s5059_s26, %s6390_s7 }
  0xa5   : > { %p5062_p9 = pnand %p5060_p7, %p6388_p8 }
  0xa7   : > { %p5063_p10 = pneg %p5062_p9 }
  0xa9   : > { %p5068_p13 = pnand %p5066_p0, %p5063_p10 }
  0xab   : > { %5071 = shalt.err (!%p5068_p13)
}
  0xac   : > { %s5072_s5 = scalar_lea.vmem %s315_s11, 512  ;;  %p5080_p2 = scmp.lt.s32.totalorder %s315_s11, %s315_s11 }
  0xad   : > { %p5073_p1 = scmp.ne.s32.totalorder %s315_s11, %s5072_s5  ;;  %p5081_p4 = scmp.lt.s32.totalorder %s5072_s5, %s5072_s5 }
  0xaf   : > { %p5075_p12 = pnand %p5073_p1, %p6388_p8  ;;  %p5082_p11 = por %p5081_p4, %p5080_p2 }
  0xb1   : > { %p5076_p3 = pneg %p5075_p12 }
  0xb3   : > { %p5083_p5 = pnand %p5082_p11, %p5076_p3 }
  0xb5   : > { %5086 = shalt.err (!%p5083_p5)
}
  0xb6   : > { %4795 = dma.hbm_to_vmem [thread:$0]  (!%p6389_p6), %s6390_s7, 512, %s315_s11, [#allocation15], %s6386_s27, %s6386_s27, %s6385_s29  }
  0xb7   : > { %s4074_s22 = sadd.s32 4294967294, %s5319_s15   ;;  %s44_s18 = sadd.s32 1, %s5315_s14 }
  0xb8   : > { %s53_s3 = sadd.s32 1, %s5299_s10  ;;  %p6391_p5 = scmp.ne.s32.totalorder %s6373_s25, 0 }
  0xb9   : > { %p60_p8 = scmp.ne.s32.totalorder %s5299_s10, %s5295_s9  ;;  %p66_p7 = scmp.ne.s32.totalorder %s5295_s9, %s5291_s30 }
  0xba   : > { %s6442_s18 = smov (!%p6391_p5, %s44_s18), %s5315_s14  ;;  %p260_p10 = scmp.eq.s32.totalorder %s4074_s22, 3 }
  0xbb   : > { %p46_p9 = scmp.ge.s32.totalorder %s6442_s18, 2  ;;  %p6392_p0 = scmp.eq.s32.totalorder %s5319_s15, 0 }
  0xbc   : > { %p6393_p1 = scmp.eq.s32.totalorder %s5442_s16, 0  ;;  %p6396_p6 = scmp.eq.s32.totalorder %s5442_s16, 3 }
  0xbd   : > { %p62_p13 = por %p6392_p0, %p60_p8  ;;  %s6444_s18 = smov (%p46_p9, %s6442_s18), 0 }
  0xbe   : > { %p5660_p12 = por %p6393_p1, %p66_p7  ;;  %6395 = sst [smem:[#allocation33_spill]] %s6444_s18 }
  0xbf   : > { %p5668_p3 = por %p6396_p6, %p60_p8  ;;  %p5672_p2 = por %p260_p10, %p66_p7 }
  0xc0   : > { %s6394_s2 = scalar_select %p5660_p12, 1, 0 }
  0xc1   : > { %s6397_s25 = scalar_select %p5668_p3, 1, 0 }
  0xc2   : > { %s6398_s11 = scalar_select %p5672_p2, 1, 0 }
  0xc3   : > { %s48_s28 = ssub.s32 %s5315_s14, %s6444_s18  ;;  %s328_s26 = sand.u32 1, %s5299_s10  }
  0xc4   : > { %6399 = sst [smem:[#allocation34_spill]] %s6398_s11  ;;  %s50_s19 = sor.u32 %s5535_s21, %s48_s28 }
  0xc5   : > { %p51_p4 = scmp.eq.s32.totalorder %s50_s19, 0  ;;  %s4753_s20 = smul.u32 24, %s328_s26 }
  0xc6   : > { %s4754_s4 = smul.u32 3, %s5311_s13  ;;  %p6400_p11 = scmp.lt.s32.totalorder %s5319_s15, 4 }
  0xc7   : > { %s5688_s5 = scalar_select %p51_p4, %s5299_s10, %s53_s3  }
  0xc8   : > { %p5683_p5 = pnand %p6400_p11, %p62_p13  ;;  %s4755_s24 = smul.u32 6, %s5315_s14 }
  0xc9   : > { %s332_s1 = scalar_lea.vmem [#allocation2], %s4753_s20  ;;  %s4085_s18 = sshll.u32 %s5311_s13, 4 }
  0xca   : > { %s341_s22 = sshll.u32 %s332_s1, 4  ;;  %s338_s6 = sadd.s32 %s4755_s24, %s4754_s4  ;;  %s5691_s22 = int_to_ptr.vmem [resolvable:$true] %s341_s22 }
  0xcb   : > { %s4081_s7 = sshll.u32 %s338_s6, 7  ;;  %s5699_s11 = scalar_lea.sflag [#allocation3], %s328_s26 }
  0xcc   : > { %s5696_s19 = scalar_lea.hbm %s6313_s0, %s4081_s7  ;;  %p5089_p7 = pneg %p5683_p5 }
  0xcd   : > { %s5087_s3 = scalar_lea.hbm %s5696_s19, 384  ;;  %s5092_s7 = scalar_lea.hbm %s6313_s0, 1536 }
  0xce   : > { %p5088_p8 = scmp.ne.s32.totalorder %s5696_s19, %s5087_s3  ;;  %p5093_p0 = scmp.lt.u32.totalorder %s5696_s19, %s6313_s0 }
  0xcf   : > { %p5094_p13 = scmp.lt.u32.totalorder %s5092_s7, %s5087_s3  ;;  %p5096_p6 = scmp.lt.u32.totalorder %s5087_s3, %s5696_s19 }
  0xd0   : > { %p5090_p9 = pnand %p5089_p7, %p5088_p8 }
  0xd1   : > { %p5095_p1 = por %p5094_p13, %p5093_p0 }
  0xd2   : > { %p5091_p10 = pneg %p5090_p9 }
  0xd3   : > { %p5097_p4 = por %p5096_p6, %p5095_p1 }
  0xd5   : > { %p5098_p11 = pnand %p5097_p4, %p5091_p10 }
  0xd7   : > { %5101 = shalt.err (!%p5098_p11)
}
  0xd8   : > { %s5102_s26 = scalar_lea.vmem %s5691_s22, 384  ;;  %s5328_s1 = smov [#allocation2]  }
  0xd9   : > { %p5103_p8 = scmp.ne.s32.totalorder %s5691_s22, %s5102_s26  ;;  %s5107_s21 = sshll.u32 %s5328_s1, 4  ;;  %s5108_s21 = int_to_ptr.vmem [resolvable:$false] %s5107_s21 }
  0xda   : > { %s5109_s28 = scalar_lea.vmem %s5108_s21, 768  ;;  %p5110_p3 = scmp.lt.s32.totalorder %s5691_s22, %s5108_s21 }
  0xdb   : > { %p5105_p9 = pnand %p5103_p8, %p5089_p7  ;;  %p5111_p0 = scmp.lt.s32.totalorder %s5109_s28, %s5102_s26 }
  0xdd   : > { %p5106_p2 = pneg %p5105_p9  ;;  %p5112_p13 = por %p5111_p0, %p5110_p3 }
  0xdf   : > { %p5113_p1 = pnand %p5112_p13, %p5106_p2 }
  0xe1   : > { %5116 = shalt.err (!%p5113_p1)
}
  0xe2   : > { %4799 = dma.hbm_to_vmem [thread:$0]  (!%p5683_p5), %s5696_s19, 384, %s5691_s22, %s5699_s11, %s6386_s27, %s6386_s27, %s6385_s29  }
  0xe3   : > { %s6402_s20 = sld [smem:[#allocation36_spill]]  ;;  %s375_s23 = scalar_lea.vmem [#allocation7], %s5547_s8 }
  0xe4   : > { %s382_s4 = sshll.u32 %s375_s23, 4  ;;  %p6403_p2 = scmp.ne.s32.totalorder %s6384_s12, 0  ;;  %s383_s4 = int_to_ptr.vmem [resolvable:$true] %s382_s4 }
  0xe9   : > { %s5735_s7 = scalar_lea.hbm %s6402_s20, %s4085_s18  ;;  %s5122_s27 = scalar_lea.hbm %s6402_s20, 32 }
  0xea   : > { %s5117_s24 = scalar_lea.hbm %s5735_s7, 16  ;;  %p5123_p5 = scmp.lt.u32.totalorder %s5735_s7, %s6402_s20 }
  0xeb   : > { %p5118_p3 = scmp.ne.s32.totalorder %s5735_s7, %s5117_s24  ;;  %p5124_p6 = scmp.lt.u32.totalorder %s5122_s27, %s5117_s24 }
  0xec   : > { %p5126_p11 = scmp.lt.u32.totalorder %s5117_s24, %s5735_s7 }
  0xed   : > { %p5120_p7 = pnand %p5118_p3, %p6403_p2  ;;  %p5125_p4 = por %p5124_p6, %p5123_p5 }
  0xef   : > { %p5121_p10 = pneg %p5120_p7  ;;  %p5127_p8 = por %p5126_p11, %p5125_p4 }
  0xf1   : > { %p5128_p9 = pnand %p5127_p8, %p5121_p10 }
  0xf3   : > { %5131 = shalt.err (!%p5128_p9)
}
  0xf4   : > { %s5132_s19 = scalar_lea.vmem %s383_s4, 16  ;;  %s5329_s1 = smov [#allocation7]  }
  0xf5   : > { %p5133_p0 = scmp.ne.s32.totalorder %s383_s4, %s5132_s19  ;;  %s5137_s21 = sshll.u32 %s5329_s1, 4  ;;  %s5138_s21 = int_to_ptr.vmem [resolvable:$false] %s5137_s21 }
  0xf6   : > { %s5139_s28 = scalar_lea.vmem %s5138_s21, 32  ;;  %p5140_p3 = scmp.lt.s32.totalorder %s383_s4, %s5138_s21 }
  0xf7   : > { %p5135_p13 = pnand %p5133_p0, %p6403_p2  ;;  %p5141_p7 = scmp.lt.s32.totalorder %s5139_s28, %s5132_s19 }
  0xf9   : > { %p5136_p1 = pneg %p5135_p13  ;;  %p5142_p12 = por %p5141_p7, %p5140_p3 }
  0xfb   : > { %p5143_p5 = pnand %p5142_p12, %p5136_p1 }
  0xfd   : > { %5146 = shalt.err (!%p5143_p5)
}
  0xfe   : > { %s6404_s3 = sld [smem:[#allocation32_spill]]  ;;  %s6406_s24 = sld [smem:[#allocation37_spill]] }
  0xff   : > { %s392_s29 = scalar_lea.vmem [#allocation8], %s5547_s8  ;;  %s6407_s11 = sand.u32 1, %s5319_s15  }
 0x100   : > { %s399_s27 = sshll.u32 %s392_s29, 4  ;;  %s390_s22 = scalar_lea.sflag [#allocation9], %s6407_s11  ;;  %s400_s27 = int_to_ptr.vmem [resolvable:$true] %s399_s27 }
 0x104   : > { %p6405_p6 = scmp.ne.s32.totalorder %s6404_s3, 0  ;;  %s5761_s26 = scalar_lea.hbm %s6406_s24, %s4085_s18 }
 0x105   : > { %s5147_s19 = scalar_lea.hbm %s5761_s26, 16  ;;  %p5153_p11 = scmp.lt.u32.totalorder %s5761_s26, %s6406_s24 }
 0x106   : > { %4805 = dma.hbm_to_vmem [thread:$0]  (!%p6405_p6), %s5735_s7, 16, %s383_s4, %s5573_s17  }
 0x107   : > { %p5148_p12 = scmp.ne.s32.totalorder %s5761_s26, %s5147_s19  ;;  %s5152_s4 = scalar_lea.hbm %s6406_s24, 32 }
 0x108   : > { %p5154_p8 = scmp.lt.u32.totalorder %s5152_s4, %s5147_s19  ;;  %p5156_p0 = scmp.lt.u32.totalorder %s5147_s19, %s5761_s26 }
 0x109   : > { %p5150_p10 = pnand %p5148_p12, %p6403_p2 }
 0x10a   : > { %p5155_p9 = por %p5154_p8, %p5153_p11 }
 0x10b   : > { %p5151_p4 = pneg %p5150_p10 }
 0x10c   : > { %p5157_p13 = por %p5156_p0, %p5155_p9 }
 0x10e   : > { %p5158_p1 = pnand %p5157_p13, %p5151_p4 }
 0x110   : > { %5161 = shalt.err (!%p5158_p1)
}
 0x111   : > { %s5162_s8 = scalar_lea.vmem %s400_s27, 16  ;;  %s5330_s21 = smov [#allocation8]  }
 0x112   : > { %p5163_p3 = scmp.ne.s32.totalorder %s400_s27, %s5162_s8  ;;  %s5167_s28 = sshll.u32 %s5330_s21, 4  ;;  %s5168_s28 = int_to_ptr.vmem [resolvable:$false] %s5167_s28 }
 0x113   : > { %s5169_s6 = scalar_lea.vmem %s5168_s28, 32  ;;  %p5170_p12 = scmp.lt.s32.totalorder %s400_s27, %s5168_s28 }
 0x114   : > { %p5165_p7 = pnand %p5163_p3, %p6403_p2  ;;  %p5171_p10 = scmp.lt.s32.totalorder %s5169_s6, %s5162_s8 }
 0x116   : > { %p5166_p5 = pneg %p5165_p7  ;;  %p5172_p6 = por %p5171_p10, %p5170_p12 }
 0x118   : > { %p5173_p8 = pnand %p5172_p6, %p5166_p5 }
 0x11a   : > { %5176 = shalt.err (!%p5173_p8)
}
 0x11b   : > { %p6408_p11 = scmp.ne.s32.totalorder %s6404_s3, 0  ;;  %s6409_s23 = sld [smem:[#allocation28_spill]] }
 0x11d   : > { %4808 = dma.hbm_to_vmem [thread:$0]  (!%p6408_p11), %s5761_s26, 16, %s400_s27, %s390_s22  }
 0x121   : > { %p6410_p4 = scmp.ne.s32.totalorder %s6409_s23, 0 }
 0x122   : > { %s5786_s12 = sand.u32 (!%p6410_p4), 1, %s5295_s9   ;;  %p6411_p2 = scmp.ne.s32.totalorder (!%p6410_p4), %s6394_s2, 0 }
 0x123   : > { %408 = sbr.rel (%p6410_p4) target bundleno = 2192 (0x890), region = 52  ;;  %s411_s11 = scalar_lea.sflag (!%p6410_p4), [#allocation3], %s5786_s12 }
 0x124   : > { %s4756_s29 = smul.u32 (!%p6410_p4), 24, %s5786_s12 }
 0x126   : > { %s5790_s19 = scalar_lea.vmem (!%p6410_p4), [#allocation2], %s4756_s29 }
 0x12a   : > { %5250 = dma.done.wait (%p6411_p2), %s411_s11, 384  }
 0x12b   : > { %5252 = vsyncadd (%p6411_p2), %s411_s11, 4294966912  ;;  %s6412_s3 = sld [smem:[#allocation24_spill]]  ;;  %s419_s27 = sand.u32 1, %s5442_s16  }
 0x12c   : > { %s6413_s26 = sld [smem:[#allocation30_spill]]  ;;  %s420_s7 = scalar_lea.sflag [#allocation6], %s419_s27 }
 0x131   : > { %s5798_s22 = sand.u32 1, %s6412_s3  }
 0x132   : > { %s4088_s17 = sshll.u32 %s5798_s22, 5  ;;  %p6414_p6 = scmp.ne.s32.totalorder %s6413_s26, 0 }
 0x133   : > { %s5801_s4 = scalar_lea.vmem [#allocation5], %s4088_s17 }
 0x134   : > { %5254 = dma.done.wait (%p6414_p6), %s420_s7, 528  }
 0x135   : > { %5256 = vsyncadd (%p6414_p6), %s420_s7, 4294966768  ;;  %s431_s2 = scalar_lea.vmem [#allocation7], %s5798_s22  ;;  %s437_s18 = scalar_lea.sflag [#allocation9], %s419_s27 }
 0x136   : > { %s439_s1 = scalar_lea.vmem [#allocation8], %s5798_s22 }
 0x137   : > { %5258 = dma.done.wait (%p6414_p6), %s437_s18, 16  }
 0x138   : > { %5260 = vsyncadd (%p6414_p6), %s437_s18, 4294967280  ;;  %p6415_p9 = scmp.eq.s32.totalorder %s5442_s16, 0 }
 0x13a   : > { %5262 = dma.done.wait (%p6415_p9), [#allocation9], 128   ;;  %p6416_p0 = pmov %p6415_p9 }
 0x13c   : > { %5264 = vsyncadd (%p6416_p0), [#allocation9], 4294967168  ;;  %p6417_p13 = pmov %p6416_p0 }
 0x13d   : > { %p6418_p1 = pmov %p6416_p0 }
 0x13e   : > { %5266 = dma.done.wait (%p6417_p13), [#allocation12], 544  }
 0x13f   : > { %5268 = vsyncadd (%p6418_p1), [#allocation12], 4294966752  ;;  %p6419_p3 = pmov %p6416_p0 }
 0x140   : > { %p6420_p7 = pmov %p6416_p0 }
 0x141   : > { %5270 = dma.done.wait (%p6419_p3), [#allocation15], 512  }
 0x142   : > { %5272 = vsyncadd (%p6420_p7), [#allocation15], 4294966784  ;;  %v5826_v0 = vld [vmem:[%s5790_s19] sm:$0xff]  ;;  %s5331_s8 = smov 124   ;;  %s5332_s21 = smov 126   ;;  %v5833_v1 = vld [vmem:[%s5790_s19 + $0x8] sm:$0xff]  ;;  %v508_v56 = vlaneseq }
 0x143   : > { %536 = vrot.lane.b32.xlu1 %v5826_v0, %s5331_s8  ;;  %522 = vrot.lane.b32.xlu0 %v5826_v0, %s5332_s21  ;;  %v5840_v2 = vld [vmem:[%s5790_s19 + $0x10] sm:$0xf]  ;;  %s5333_s16 = smov 122   ;;  %v600_v3 = vrot.slane %v5833_v1, 1  ;;  %v599_v5 = vrot.slane %v5826_v0, 1  ;;  %vm584_vm0 = vcmask 1046528  }
 0x144   : > { %v602_v4 = vrot.slane %v5840_v2, 1  ;;  %s5334_s28 = smov 120   ;;  %v681_v8 = vrot.slane %v5833_v1, 2  ;;  %v683_v9 = vrot.slane %v5840_v2, 2  ;;  %v680_v10 = vrot.slane %v5826_v0, 2  ;;  %v922_v23 = vld [vmem:[#allocation11] sm:$0xff] }
 0x145   : > { %v601_v7 = vsel %vm584_vm0, %v599_v5, %v600_v3  ;;  %vm666_vm1 = vcmask 1045504   ;;  %v762_v13 = vrot.slane %v5833_v1, 3  ;;  %v764_v14 = vrot.slane %v5840_v2, 3  ;;  %v923_v24 = vld [vmem:[#allocation11 + $0x8] sm:$0xff]  ;;  %v924_v29 = vld [vmem:[#allocation11 + $0x10] sm:$0xff]  ;;  %v925_v30 = vld [vmem:[#allocation11 + $0x18] sm:$0xff] }
 0x146   : > { %v603_v6 = vsel %vm584_vm0, %v600_v3, %v602_v4  ;;  %v684_v11 = vsel %vm666_vm1, %v681_v8, %v683_v9  ;;  %v682_v12 = vsel %vm666_vm1, %v680_v10, %v681_v8  ;;  %v761_v15 = vrot.slane %v5826_v0, 3  ;;  %v504_v61 = vld [vmem:[%s5801_s4] sm:$0xff]  ;;  %s5339_s6 = smov 4   ;;  %s6421_s23 = sld [smem:[#allocation27_spill]] }
 0x147   : > { %538 = vrot.lane.b32.xlu1 %v5833_v1, %s5331_s8  ;;  %524 = vrot.lane.b32.xlu0 %v5833_v1, %s5332_s21  ;;  %vm747_vm2 = vcmask 1044480   ;;  %v843_v18 = vrot.slane %v5833_v1, 4  ;;  %v845_v19 = vrot.slane %v5840_v2, 4  ;;  %v842_v20 = vrot.slane %v5826_v0, 4  ;;  %s6422_s29 = sld [smem:[#allocation26_spill]]  ;;  %s4093_s11 = sshll.u32 %s5786_s12, 3 }
 0x148   : > { %v765_v16 = vsel %vm747_vm2, %v762_v13, %v764_v14  ;;  %v763_v17 = vsel %vm747_vm2, %v761_v15, %v762_v13  ;;  %vm828_vm3 = vcmask 1043456   ;;  %v930_v25 = vand.u32 4294901760, %v922_v23  ;;  %s500_s27 = scalar_lea.vmem [#allocation16], %s4093_s11  ;;  %s3874_s18 = scalar_lea.sflag [#allocation4], %s5786_s12 }
 0x149   : > { %v846_v21 = vsel %vm828_vm3, %v843_v18, %v845_v19  ;;  %v844_v22 = vsel %vm828_vm3, %v842_v20, %v843_v18  ;;  %v933_v26 = vand.u32 4294901760, %v923_v24  ;;  %v936_v33 = vand.u32 4294901760, %v924_v29  ;;  %s3889_s22 = sshll.u32 %s500_s27, 4  ;;  %p6424_p12 = scmp.ne.s32.totalorder %s6397_s25, 0  ;;  %s6251_s22 = int_to_ptr.vmem [resolvable:$true] %s3889_s22 }
 0x14a   : > { %v5898_v27 = vsub.f32 %v922_v23, %v930_v25  ;;  %v939_v34 = vand.u32 4294901760, %v925_v30  ;;  %v5335_v43 = vmov 0.0|0.0   ;;  %vm5336_vm4 = vmmov 0  }
 0x14b   : > { %552 = vrot.lane.b32.xlu1 %v5833_v1, %s5333_s16  ;;  %550 = vrot.lane.b32.xlu0 %v5826_v0, %s5333_s16  ;;  %v5900_v28 = vsub.f32 %v923_v24, %v933_v26  ;;  %v5908_v37 = vsub.f32 %v924_v29, %v936_v33  ;;  %v5337_v47 = vmov 0.0   ;;  %v5926_v51 = vpack.c.bf16 %v933_v26, %v930_v25 }
 0x14c   : > { %v1011_v31 = vand.u32 4294901760, %v5898_v27  ;;  %v5910_v38 = vsub.f32 %v925_v30, %v939_v34  ;;  %4557 = vmatprep.subr.bf16.mxu0 %v5335_v43  ;;  %4258 = vmatprep.mubr.msk.f32.mxu0 %vm5336_vm4, %v5337_v47  ;;  %v5932_v53 = vpack.c.bf16 %v939_v34, %v936_v33  ;;  %v5942_v58 = vshrl.u32 %v508_v56, 7  ;;  %v505_v56 = vld [vmem:[%s5801_s4 + $0x8] sm:$0xff] }
 0x14d   : > { %v1018_v32 = vand.u32 4294901760, %v5900_v28  ;;  %v1025_v41 = vand.u32 4294901760, %v5908_v37  ;;  %4551 = vmatprep.subr.bf16.mxu1 %v5335_v43  ;;  %4247 = vmatprep.mubr.msk.f32.mxu1 %vm5336_vm4, %v5337_v47  ;;  %v4564_v52 = vpack.c.bf16 %v5900_v28, %v5898_v27  ;;  %vm899_vm5 = vcmask 261120  }
 0x14e   : > { %v1012_v35 = vsub.f32 %v5898_v27, %v1011_v31  ;;  %v1032_v42 = vand.u32 4294901760, %v5910_v38  ;;  %4553 = vmatpush3.bf16.msra.mxu1 %v5926_v51  ;;  %v4567_v54 = vpack.c.bf16 %v5910_v38, %v5908_v37  ;;  %v5945_v59 = vsub.s32 0, %v5942_v58  ;;  %v1451_v27 = vld [vmem:[#allocation13] sm:$0x3] }
 0x14f   : > { %566 = vrot.lane.b32.xlu1 %v5833_v1, %s5334_s28  ;;  %564 = vrot.lane.b32.xlu0 %v5826_v0, %s5334_s28  ;;  %v1019_v36 = vsub.f32 %v5900_v28, %v1018_v32  ;;  %v1026_v45 = vsub.f32 %v5908_v37, %v1025_v41  ;;  %v5938_v55 = vpack.c.bf16 %v1018_v32, %v1011_v31  ;;  %v5948_v60 = vsub.s32 1, %v5942_v58 }
 0x150   : > { %v1013_v39 = vand.u32 4294901760, %v1012_v35  ;;  %v1033_v46 = vsub.f32 %v5910_v38, %v1032_v42  ;;  %4554 = vmatprep.subr.bf16.mxu1 %v5335_v43  ;;  %v5940_v57 = vpack.c.bf16 %v1032_v42, %v1025_v41  ;;  %v511_v3 = vrot.slane %v504_v61, %v5945_v59 }
 0x151   : > { %v1020_v40 = vand.u32 4294901760, %v1019_v36  ;;  %v1027_v48 = vand.u32 4294901760, %v1026_v45  ;;  %v519_v4 = vrot.slane %v504_v61, %v5948_v60  ;;  %v5957_v8 = vsub.s32 2, %v5942_v58 }
 0x152   : > { %v1034_v49 = vand.u32 4294901760, %v1033_v46  ;;  %4556 = vmatpush3.bf16.msra.mxu1 %v5932_v53  ;;  %v513_v9 = vmul.f32 %v511_v3, %v5833_v1  ;;  %v5965_v14 = vsub.s32 4, %v5942_v58  ;;  %vm920_vm6 = vcmask 1040384  }
 0x153   : > { %606 = vrot.lane.b32.xlu1 %v603_v6, %s5332_s21  ;;  %604 = vrot.lane.b32.xlu0 %v601_v7, %s5332_s21  ;;  %v4558_v44 = vpack.c.bf16 %v1020_v40, %v1013_v39  ;;  %v535_v18 = vrot.slane %v504_v61, %v5957_v8  ;;  %v5975_v40 = vsub.s32 6, %v5942_v58  ;;  %vm1456_vm7 = vcmask 1041408  }
 0x154   : > { %v4561_v50 = vpack.c.bf16 %v1034_v49, %v1027_v48  ;;  %4305 = vmatprep.subr.mxu1 %v5337_v47  ;;  %v563_v23 = vrot.slane %v504_v61, %v5965_v14  ;;  %v1458_v28 = vsel %vm1456_vm7, %v1451_v27, 0  ;;  %vm1452_vm8 = vcmask 15360  }
 0x155   : > { %4559 = vmatpush3.bf16.msra.mxu0 %v4558_v44  ;;  %v1461_v37 = vand.u32 4294901760, %v1458_v28  ;;  %vm1972_vm9 = vcmask 130048  }
 0x156   : > { %4560 = vmatprep.subr.bf16.mxu0 %v5335_v43 }
 0x157   : > { %620 = vrot.lane.b32.xlu1 %v603_v6, %s5331_s8  ;;  %618 = vrot.lane.b32.xlu0 %v601_v7, %s5331_s8 }
 0x159   : > { %4562 = vmatpush3.bf16.msra.mxu0 %v4561_v50  ;;  %v5978_v50 = vsub.s32 7, %v5942_v58 }
 0x15a   : > { %4563 = vmatprep.subr.bf16.mxu0 %v5335_v43 }
 0x15b   : > { %634 = vrot.lane.b32.xlu1 %v603_v6, %s5333_s16  ;;  %632 = vrot.lane.b32.xlu0 %v601_v7, %s5333_s16 }
 0x15f   : > { %648 = vrot.lane.b32.xlu1 %v603_v6, %s5334_s28  ;;  %646 = vrot.lane.b32.xlu0 %v601_v7, %s5334_s28  ;;  %v5954_v7 = vsub.s32 5, %v5942_v58 }
 0x163   : > { %687 = vrot.lane.b32.xlu1 %v684_v11, %s5332_s21  ;;  %685 = vrot.lane.b32.xlu0 %v682_v12, %s5332_s21 }
 0x167   : > { %701 = vrot.lane.b32.xlu1 %v684_v11, %s5331_s8  ;;  %699 = vrot.lane.b32.xlu0 %v682_v12, %s5331_s8 }
 0x16b   : > { %715 = vrot.lane.b32.xlu1 %v684_v11, %s5333_s16  ;;  %713 = vrot.lane.b32.xlu0 %v682_v12, %s5333_s16 }
 0x16f   : > { %729 = vrot.lane.b32.xlu1 %v684_v11, %s5334_s28  ;;  %727 = vrot.lane.b32.xlu0 %v682_v12, %s5334_s28  ;;  %v5961_v11 = vsub.s32 3, %v5942_v58  ;;  %v512_v12 = vmul.f32 %v511_v3, %v5826_v0  ;;  %v597_v3 = vrot.slane %v504_v61, %v5975_v40 }
 0x171   : > { %v549_v20 = vrot.slane %v504_v61, %v5961_v11 }
 0x173   : > { %768 = vrot.lane.b32.xlu1 %v765_v16, %s5332_s21  ;;  %766 = vrot.lane.b32.xlu0 %v763_v17, %s5332_s21 }
 0x177   : > { %782 = vrot.lane.b32.xlu1 %v765_v16, %s5331_s8  ;;  %780 = vrot.lane.b32.xlu0 %v763_v17, %s5331_s8 }
 0x17b   : > { %796 = vrot.lane.b32.xlu1 %v765_v16, %s5333_s16  ;;  %794 = vrot.lane.b32.xlu0 %v763_v17, %s5333_s16 }
 0x17f   : > { %810 = vrot.lane.b32.xlu1 %v765_v16, %s5334_s28  ;;  %808 = vrot.lane.b32.xlu0 %v763_v17, %s5334_s28  ;;  %v577_v17 = vrot.slane %v504_v61, %v5954_v7 }
 0x181   : > { %v579_v26 = vmul.f32 %v577_v17, %v5833_v1  ;;  %v580_v29 = vmul.f32 %v577_v17, %v5840_v2  ;;  %v578_v30 = vmul.f32 %v577_v17, %v5826_v0 }
 0x183   : > { %849 = vrot.lane.b32.xlu1 %v846_v21, %s5332_s21  ;;  %847 = vrot.lane.b32.xlu0 %v844_v22, %s5332_s21  ;;  %v586_v41 = vrot.slane %v579_v26, 1  ;;  %v588_v42 = vrot.slane %v580_v29, 1  ;;  %v585_v46 = vrot.slane %v578_v30, 1 }
 0x187   : > { %863 = vrot.lane.b32.xlu1 %v846_v21, %s5331_s8  ;;  %861 = vrot.lane.b32.xlu0 %v844_v22, %s5331_s8 }
 0x18b   : > { %877 = vrot.lane.b32.xlu1 %v846_v21, %s5333_s16  ;;  %875 = vrot.lane.b32.xlu0 %v844_v22, %s5333_s16 }
 0x18f   : > { %891 = vrot.lane.b32.xlu1 %v846_v21, %s5334_s28  ;;  %889 = vrot.lane.b32.xlu0 %v844_v22, %s5334_s28 }
 0x1b5   : > { %v537_v62 = vpop.permute.xlu1 %536  ;;  %v523_v63 = vpop.permute.xlu0 %522 }
 0x1b6   : > { %v528_v13 = vmul.f32 %v523_v63, %v519_v4  ;;  %v542_v31 = vmul.f32 %v537_v62, %v535_v18 }
 0x1b8   : > { %v530_v21 = vadd.f32 %v528_v13, %v512_v12  ;;  %v659_v12 = vrot.slane %v505_v56, %v5957_v8  ;;  %v631_v13 = vrot.slane %v505_v56, %v5945_v59 }
 0x1b9   : > { %v539_v5 = vpop.permute.xlu1 %538  ;;  %v525_v6 = vpop.permute.xlu0 %524 }
 0x1ba   : > { %v529_v10 = vmul.f32 %v525_v6, %v519_v4  ;;  %v543_v22 = vmul.f32 %v539_v5, %v535_v18  ;;  %v544_v35 = vadd.f32 %v542_v31, %v530_v21  ;;  %v589_v4 = vsel %vm584_vm0, %v586_v41, %v588_v42 }
 0x1bb   : > { %v587_v5 = vsel %vm584_vm0, %v585_v46, %v586_v41 }
 0x1bc   : > { %v531_v19 = vadd.f32 %v529_v10, %v513_v9  ;;  %v617_v10 = vrot.slane %v504_v61, %v5978_v50  ;;  %v660_v61 = vmul.f32 %v659_v12, %v5826_v0 }
 0x1bd   : > { %v553_v15 = vpop.permute.xlu1 %552  ;;  %v551_v16 = vpop.permute.xlu0 %550 }
 0x1be   : > { %v545_v32 = vadd.f32 %v543_v22, %v531_v19  ;;  %v557_v33 = vmul.f32 %v553_v15, %v549_v20  ;;  %v556_v34 = vmul.f32 %v551_v16, %v549_v20 }
 0x1c0   : > { %v559_v48 = vadd.f32 %v557_v33, %v545_v32  ;;  %v558_v49 = vadd.f32 %v556_v34, %v544_v35 }
 0x1c1   : > { %v567_v24 = vpop.permute.xlu1 %566  ;;  %v565_v25 = vpop.permute.xlu0 %564 }
 0x1c2   : > { %v571_v36 = vmul.f32 %v567_v24, %v563_v23  ;;  %v570_v39 = vmul.f32 %v565_v25, %v563_v23  ;;  %v645_v23 = vrot.slane %v505_v56, %v5948_v60  ;;  %v661_v24 = vmul.f32 %v659_v12, %v5833_v1 }
 0x1c3   : > { %v662_v25 = vmul.f32 %v659_v12, %v5840_v2 }
 0x1c4   : > { %v573_v62 = vadd.f32 %v571_v36, %v559_v48  ;;  %v572_v63 = vadd.f32 %v570_v39, %v558_v49  ;;  %v668_v41 = vrot.slane %v661_v24, 2 }
 0x1c5   : > { %v607_v44 = vpop.permute.xlu1 %606  ;;  %v605_v45 = vpop.permute.xlu0 %604  ;;  %v670_v42 = vrot.slane %v662_v25, 2 }
 0x1c6   : > { %v593_v15 = vadd.f32 %v589_v4, %v573_v62  ;;  %v611_v16 = vmul.f32 %v607_v44, %v597_v3  ;;  %v592_v17 = vadd.f32 %v587_v5, %v572_v63  ;;  %v610_v18 = vmul.f32 %v605_v45, %v597_v3 }
 0x1c7   : > { %v667_v44 = vrot.slane %v660_v61, 2  ;;  %v679_v3 = vrot.slane %v505_v56, %v5961_v11  ;;  %v740_v4 = vrot.slane %v505_v56, %v5978_v50  ;;  %v671_v5 = vsel %vm666_vm1, %v668_v41, %v670_v42 }
 0x1c8   : > { %v613_v26 = vadd.f32 %v611_v16, %v593_v15  ;;  %v612_v29 = vadd.f32 %v610_v18, %v592_v17  ;;  %v726_v61 = vrot.slane %v505_v56, %v5975_v40 }
 0x1c9   : > { %v621_v6 = vpop.permute.xlu1 %620  ;;  %v619_v9 = vpop.permute.xlu0 %618 }
 0x1ca   : > { %v625_v21 = vmul.f32 %v621_v6, %v617_v10  ;;  %v624_v22 = vmul.f32 %v619_v9, %v617_v10  ;;  %v669_v6 = vsel %vm666_vm1, %v667_v44, %v668_v41  ;;  %v698_v9 = vrot.slane %v505_v56, %v5965_v14 }
 0x1cc   : > { %v627_v34 = vadd.f32 %v625_v21, %v613_v26  ;;  %v626_v35 = vadd.f32 %v624_v22, %v612_v29  ;;  %v741_v21 = vmul.f32 %v740_v4, %v5826_v0 }
 0x1cd   : > { %v635_v19 = vpop.permute.xlu1 %634  ;;  %v633_v20 = vpop.permute.xlu0 %632 }
 0x1ce   : > { %v639_v30 = vmul.f32 %v635_v19, %v631_v13  ;;  %v638_v31 = vmul.f32 %v633_v20, %v631_v13  ;;  %v712_v13 = vrot.slane %v505_v56, %v5954_v7  ;;  %v742_v19 = vmul.f32 %v740_v4, %v5833_v1 }
 0x1cf   : > { %v743_v20 = vmul.f32 %v740_v4, %v5840_v2 }
 0x1d0   : > { %v641_v45 = vadd.f32 %v639_v30, %v627_v34  ;;  %v640_v46 = vadd.f32 %v638_v31, %v626_v35  ;;  %v748_v34 = vrot.slane %v741_v21, 3 }
 0x1d1   : > { %v649_v32 = vpop.permute.xlu1 %648  ;;  %v647_v33 = vpop.permute.xlu0 %646 }
 0x1d2   : > { %v653_v36 = vmul.f32 %v649_v32, %v645_v23  ;;  %v652_v39 = vmul.f32 %v647_v33, %v645_v23  ;;  %v749_v32 = vrot.slane %v742_v19, 3  ;;  %v751_v33 = vrot.slane %v743_v20, 3 }
 0x1d4   : > { %v655_v62 = vadd.f32 %v653_v36, %v641_v45  ;;  %v654_v63 = vadd.f32 %v652_v39, %v640_v46  ;;  %v750_v56 = vsel %vm747_vm2, %v748_v34, %v749_v32 }
 0x1d5   : > { %v688_v48 = vpop.permute.xlu1 %687  ;;  %v686_v49 = vpop.permute.xlu0 %685 }
 0x1d6   : > { %v675_v15 = vadd.f32 %v671_v5, %v655_v62  ;;  %v692_v16 = vmul.f32 %v688_v48, %v679_v3  ;;  %v674_v17 = vadd.f32 %v669_v6, %v654_v63  ;;  %v691_v18 = vmul.f32 %v686_v49, %v679_v3  ;;  %v506_v48 = vld [vmem:[%s5801_s4 + $0x10] sm:$0xff] }
 0x1d7   : > { %v752_v49 = vsel %vm747_vm2, %v749_v32, %v751_v33  ;;  %v760_v5 = vrot.slane %v506_v48, %v5945_v59 }
 0x1d8   : > { %v694_v26 = vadd.f32 %v692_v16, %v675_v15  ;;  %v693_v29 = vadd.f32 %v691_v18, %v674_v17  ;;  %v793_v18 = vrot.slane %v506_v48, %v5957_v8 }
 0x1d9   : > { %v702_v10 = vpop.permute.xlu1 %701  ;;  %v700_v12 = vpop.permute.xlu0 %699 }
 0x1da   : > { %v706_v22 = vmul.f32 %v702_v10, %v698_v9  ;;  %v705_v23 = vmul.f32 %v700_v12, %v698_v9  ;;  %v821_v10 = vrot.slane %v506_v48, %v5965_v14  ;;  %v779_v12 = vrot.slane %v506_v48, %v5948_v60 }
 0x1db   : > { %v807_v14 = vrot.slane %v506_v48, %v5961_v11 }
 0x1dc   : > { %v708_v35 = vadd.f32 %v706_v22, %v694_v26  ;;  %v707_v36 = vadd.f32 %v705_v23, %v693_v29  ;;  %v823_v19 = vmul.f32 %v821_v10, %v5833_v1  ;;  %v824_v20 = vmul.f32 %v821_v10, %v5840_v2 }
 0x1dd   : > { %v716_v24 = vpop.permute.xlu1 %715  ;;  %v714_v25 = vpop.permute.xlu0 %713  ;;  %v822_v21 = vmul.f32 %v821_v10, %v5826_v0 }
 0x1de   : > { %v720_v30 = vmul.f32 %v716_v24, %v712_v13  ;;  %v719_v31 = vmul.f32 %v714_v25, %v712_v13  ;;  %v832_v32 = vrot.slane %v824_v20, 4 }
 0x1df   : > { %v829_v33 = vrot.slane %v822_v21, 4 }
 0x1e0   : > { %v722_v42 = vadd.f32 %v720_v30, %v708_v35  ;;  %v721_v44 = vadd.f32 %v719_v31, %v707_v36  ;;  %v830_v31 = vrot.slane %v823_v19, 4 }
 0x1e1   : > { %v730_v39 = vpop.permute.xlu1 %729  ;;  %v728_v41 = vpop.permute.xlu0 %727 }
 0x1e2   : > { %v734_v45 = vmul.f32 %v730_v39, %v726_v61  ;;  %v733_v46 = vmul.f32 %v728_v41, %v726_v61  ;;  %v833_v41 = vsel %vm828_vm3, %v830_v31, %v832_v32 }
 0x1e4   : > { %v736_v62 = vadd.f32 %v734_v45, %v722_v42  ;;  %v735_v63 = vadd.f32 %v733_v46, %v721_v44  ;;  %v831_v42 = vsel %vm828_vm3, %v829_v33, %v830_v31 }
 0x1e5   : > { %v769_v3 = vpop.permute.xlu1 %768  ;;  %v767_v4 = vpop.permute.xlu0 %766 }
 0x1e6   : > { %v756_v6 = vadd.f32 %v752_v49, %v736_v62  ;;  %v755_v9 = vadd.f32 %v750_v56, %v735_v63  ;;  %v773_v16 = vmul.f32 %v769_v3, %v760_v5  ;;  %v772_v17 = vmul.f32 %v767_v4, %v760_v5 }
 0x1e7   : > { %v841_v49 = vrot.slane %v506_v48, %v5954_v7  ;;  %v860_v63 = vrot.slane %v506_v48, %v5975_v40  ;;  %v4094_v7 = vld [vmem:[%s5801_s4 + $0x18] ss:$0 sm:$0xff]  ;;  %s6423_s4 = sld [smem:[#allocation42_spill]] }
 0x1e8   : > { %v775_v61 = vadd.f32 %v773_v16, %v756_v6  ;;  %v774_v26 = vadd.f32 %v772_v17, %v755_v9  ;;  %v874_v9 = vrot.slane %v506_v48, %v5978_v50 }
 0x1e9   : > { %v783_v13 = vpop.permute.xlu1 %782  ;;  %v781_v15 = vpop.permute.xlu0 %780 }
 0x1ea   : > { %v787_v22 = vmul.f32 %v783_v13, %v779_v12  ;;  %v786_v23 = vmul.f32 %v781_v15, %v779_v12 }
 0x1ec   : > { %v789_v8 = vadd.f32 %v787_v22, %v775_v61  ;;  %v788_v34 = vadd.f32 %v786_v23, %v774_v26 }
 0x1ed   : > { %v797_v24 = vpop.permute.xlu1 %796  ;;  %v795_v25 = vpop.permute.xlu0 %794 }
 0x1ee   : > { %v801_v29 = vmul.f32 %v797_v24, %v793_v18  ;;  %v800_v30 = vmul.f32 %v795_v25, %v793_v18 }
 0x1f0   : > { %v803_v2 = vadd.f32 %v801_v29, %v789_v8  ;;  %v802_v36 = vadd.f32 %v800_v30, %v788_v34 }
 0x1f1   : > { %v811_v1 = vpop.permute.xlu1 %810  ;;  %v809_v35 = vpop.permute.xlu0 %808 }
 0x1f2   : > { %v815_v0 = vmul.f32 %v811_v1, %v807_v14  ;;  %v814_v39 = vmul.f32 %v809_v35, %v807_v14 }
 0x1f4   : > { %v817_v11 = vadd.f32 %v815_v0, %v803_v2  ;;  %v816_v44 = vadd.f32 %v814_v39, %v802_v36 }
 0x1f5   : > { %v850_v45 = vpop.permute.xlu1 %849  ;;  %v848_v46 = vpop.permute.xlu0 %847 }
 0x1f6   : > { %v837_v56 = vadd.f32 %v833_v41, %v817_v11  ;;  %v836_v62 = vadd.f32 %v831_v42, %v816_v44  ;;  %v854_v5 = vmul.f32 %v850_v45, %v841_v49  ;;  %v853_v6 = vmul.f32 %v848_v46, %v841_v49 }
 0x1f8   : > { %v856_v16 = vadd.f32 %v854_v5, %v837_v56  ;;  %v855_v17 = vadd.f32 %v853_v6, %v836_v62 }
 0x1f9   : > { %v864_v3 = vpop.permute.xlu1 %863  ;;  %v862_v4 = vpop.permute.xlu0 %861 }
 0x1fa   : > { %v868_v10 = vmul.f32 %v864_v3, %v860_v63  ;;  %v867_v12 = vmul.f32 %v862_v4, %v860_v63 }
 0x1fc   : > { %v870_v20 = vadd.f32 %v868_v10, %v856_v16  ;;  %v869_v21 = vadd.f32 %v867_v12, %v855_v17  ;;  %v5338_v10 = vmov 1966171168  }
 0x1fd   : > { %v878_v13 = vpop.permute.xlu1 %877  ;;  %v876_v15 = vpop.permute.xlu0 %875  ;;  %v1425_v12 = vunpack.c.l.s4 %v5338_v10 }
 0x1fe   : > { %v882_v18 = vmul.f32 %v878_v13, %v874_v9  ;;  %v881_v19 = vmul.f32 %v876_v15, %v874_v9 }
 0x1ff   : > { %v1426_v13 = vunpack.c.0.s8 %v1425_v12 }
 0x200   : > { %v884_v40 = vadd.f32 %v882_v18, %v870_v20  ;;  %v883_v24 = vadd.f32 %v881_v19, %v869_v21  ;;  %v1422_v19 = vld [vmem:[%s431_s2] sm:$0x1] }
 0x201   : > { %v892_v22 = vpop.permute.xlu1 %891  ;;  %v890_v23 = vpop.permute.xlu0 %889  ;;  %v1429_v15 = vsub.s32 %v1426_v13, %v5942_v58  ;;  %v1441_v21 = vld [vmem:[%s439_s1] sm:$0x1]  ;;  %s5177_s1 = scalar_lea.vmem %s6251_s22, 128 }
 0x202   : > { %v896_v25 = vmul.f32 %v4094_v7, %v892_v22  ;;  %v895_v14 = vmul.f32 %v4094_v7, %v890_v23  ;;  %p5178_p5 = scmp.ne.s32.totalorder %s6251_s22, %s5177_s1 }
 0x204   : > { %v6018_v61 = vadd.f32 %v896_v25, %v884_v40  ;;  %v6020_v50 = vadd.f32 %v895_v14, %v883_v24  ;;  %v1538_v40 = vsub.f32 %v1458_v28, %v1461_v37  ;;  %p5179_p10 = pnand %p5178_p5, %p6424_p12 }
 0x206   : > { %v901_v48 = vsel %vm899_vm5, %v6018_v61, 0.0  ;;  %v910_v26 = vmul.f32 %v6018_v61, %v6018_v61  ;;  %v900_v29 = vsel %vm899_vm5, %v6020_v50, 0.0  ;;  %v909_v30 = vmul.f32 %v6020_v50, %v6020_v50  ;;  %p5180_p8 = pneg %p5179_p10 }
 0x207   : > { %v902_v31 = vadd.f32 %v901_v48, %v900_v29  ;;  %v1539_v48 = vand.u32 4294901760, %v1538_v40 }
 0x208   : > { %v912_v32 = vsel %vm899_vm5, %v910_v26, 0.0  ;;  %v911_v33 = vsel %vm899_vm5, %v909_v30, 0.0 }
 0x209   : > { %v903_v8 = vrot.slane %v902_v31, 4  ;;  %v913_v34 = vadd.f32 %v912_v32, %v911_v33  ;;  %v1540_v29 = vsub.f32 %v1538_v40, %v1539_v48 }
 0x20b   : > { %v904_v1 = vadd.f32 %v903_v8, %v902_v31  ;;  %v914_v35 = vrot.slane %v913_v34, 4  ;;  %v1541_v32 = vand.u32 4294901760, %v1540_v29 }
 0x20d   : > { %v905_v2 = vrot.slane %v904_v1, 2  ;;  %v915_v36 = vadd.f32 %v914_v35, %v913_v34 }
 0x20f   : > { %v906_v0 = vadd.f32 %v905_v2, %v904_v1  ;;  %v916_v39 = vrot.slane %v915_v36, 2 }
 0x211   : > { %v907_v41 = vrot.slane %v906_v0, 1  ;;  %v917_v42 = vadd.f32 %v916_v39, %v915_v36 }
 0x213   : > { %v918_v11 = vrot.slane %v917_v42, 1  ;;  %v908_v44 = vadd.f32 %v907_v41, %v906_v0 }
 0x215   : > { %v919_v45 = vadd.f32 %v918_v11, %v917_v42 }
 0x217   : > { %v921_v46 = vsel %vm920_vm6, %v908_v44, %v919_v45 }
 0x218   : > { %v927_v49 = vsel %vm899_vm5, %v921_v46, 0 }
 0x219   : > { %v998_v56 = vand.u32 4294901760, %v927_v49 }
 0x21b   : > { %4259 = vmatmul.mubr.f32.vlgmr.msra.gmra.mrb[0].mxu0 %v998_v56  ;;  %v999_v62 = vsub.f32 %v927_v49, %v998_v56 }
 0x21c   : > { %4565 = vmatpush3.bf16.msra.mxu0 %v4564_v52  ;;  %4269 = vmatprep.mubr.msk.f32.mxu0 %vm5336_vm4, %v5337_v47 }
 0x21d   : > { %4566 = vmatprep.subr.bf16.mxu0 %v5335_v43  ;;  %v1000_v63 = vand.u32 4294901760, %v999_v62 }
 0x21f   : > { %v1001_v3 = vsub.f32 %v999_v62, %v1000_v63 }
 0x220   : > { %4568 = vmatpush3.bf16.msra.mxu0 %v4567_v54 }
 0x221   : > { %v1002_v4 = vand.u32 4294901760, %v1001_v3  ;;  %4569 = vmatprep.subr.bf16.mxu0 %v5335_v43 }
 0x223   : > { %4248 = vmatmul.mubr.f32.vlgmr.msra.gmra.mrb[0].mxu1 %v1002_v4  ;;  %4270 = vmatmul.mubr.f32.vlgmr.msra.gmra.mrb[0].mxu0 %v999_v62 }
 0x224   : > { %4571 = vmatpush3.bf16.msra.mxu0 %v5926_v51  ;;  %4280 = vmatprep.mubr.msk.f32.mxu0 %vm5336_vm4, %v5337_v47 }
 0x225   : > { %4572 = vmatprep.subr.bf16.mxu0 %v5335_v43  ;;  %4307 = vmatprep.mubr.msk.f32.mxu1 %vm5336_vm4, %v5337_v47 }
 0x226   : > { %4306 = vmatpush3.msra.mxu1 %v1461_v37 }
 0x227   : > { %4310 = vmatprep.subr.mxu1 %v5337_v47 }
 0x228   : > { %4574 = vmatpush3.bf16.msra.mxu0 %v5932_v53 }
 0x229   : > { %4575 = vmatprep.subr.bf16.mxu0 %v5335_v43 }
 0x22b   : > { %4281 = vmatmul.mubr.f32.vlgmr.msra.gmra.mrb[0].mxu0 %v1000_v63 }
 0x22c   : > { %4577 = vmatpush3.bf16.msra.mxu0 %v5938_v55  ;;  %4291 = vmatprep.mubr.msk.f32.mxu0 %vm5336_vm4, %v5337_v47 }
 0x22d   : > { %4578 = vmatprep.subr.bf16.mxu0 %v5335_v43 }
 0x230   : > { %4580 = vmatpush3.bf16.msra.mxu0 %v5940_v57 }
 0x231   : > { %4581 = vmatprep.subr.bf16.mxu0 %v5335_v43 }
 0x233   : > { %4292 = vmatmul.mubr.f32.vlgmr.msra.gmra.mrb[0].mxu0 %v998_v56 }
 0x234   : > { %4583 = vmatpush3.bf16.msra.mxu0 %v5926_v51  ;;  %4302 = vmatprep.mubr.msk.f32.mxu0 %vm5336_vm4, %v5337_v47 }
 0x235   : > { %4584 = vmatprep.subr.bf16.mxu0 %v5335_v43 }
 0x238   : > { %4586 = vmatpush3.bf16.msra.mxu0 %v5932_v53 }
 0x239   : > { %4644 = vmatprep.subr.bf16.mxu0 %v5335_v43 }
 0x23b   : > { %4303 = vmatmul.mubr.f32.vlgmr.msra.gmra.mrb[0].mxu0 %v998_v56 }
 0x23c   : > { %4454 = vmatprep.mubr.msk.f32.mxu0 %vm5336_vm4, %v5337_v47 }
 0x2f6   : > { %v1004_v38 = vpop.f32.mrb[0].mxu1 }
 0x2f7   : > { %v4249_v51 = vpop.f32.mrb[1].mxu1 }
 0x30e   : > { %v1410_v52 = vpop.f32.mrb[0].mxu0 }
 0x30f   : > { %v4695_v54 = vadd.f32 %v1410_v52, %v1004_v38  ;;  %v4304_v53 = vpop.f32.mrb[1].mxu0 }
 0x311   : > { %v1414_v55 = vmul.f32 0.00390625, %v4695_v54 }
 0x313   : > { %v1415_v57 = vmul.f32 %v1414_v55, %v1414_v55 }
 0x315   : > { %v1417_v5 = vrot.slane %v1415_v57, 7 }
 0x317   : > { %v1419_v6 = vsub.f32 %v1414_v55, %v1417_v5  ;;  %v1953_v5 = vld [vmem:[#allocation10] sm:$0xff] }
 0x318   : > { %v1974_v12 = vsel %vm1972_vm9, %v1953_v5, 0 }
 0x319   : > { %v1420_v9 = vadd.f32 1e-05, %v1419_v6 }
 0x31b   : > { %4926 = vrsqrt.f32 %v1420_v9 }
 0x325   : > { %v4927_v16 = vpop.eup %4926 }
 0x326   : > { %v1430_v17 = vrot.slane %v4927_v16, %v1429_v15 }
 0x328   : > { %v1431_v18 = vcombine.high %v1430_v17, %v1430_v17 }
 0x32a   : > { %v1438_v7 = vrot.slane %v1431_v18, %v1429_v15  ;;  %v6098_v15 = vand.u32 4294901760, %v1974_v12 }
 0x32c   : > { %v1440_v20 = vmul.f32 %v1438_v7, %v1422_v19  ;;  %v2044_v17 = vsub.f32 %v1974_v12, %v6098_v15 }
 0x32e   : > { %v1442_v22 = vmul.f32 %v1440_v20, %v1414_v55  ;;  %v2045_v19 = vand.u32 4294901760, %v2044_v17 }
 0x330   : > { %v1443_v23 = vsub.f32 %v1441_v21, %v1442_v22  ;;  %v4942_v21 = vld [vmem:[%s5790_s19] sm:$0xff] }
 0x332   : > { %v1448_v24 = vrot.slane %v1443_v23, %v5945_v59 }
 0x334   : > { %v1450_v25 = vsel %vm920_vm6, %v1440_v20, %v1448_v24  ;;  %v4943_v24 = vld [vmem:[%s5790_s19 + $0x8] sm:$0xff] }
 0x335   : > { %v1454_v14 = vsel %vm1452_vm8, %v1450_v25, 0 }
 0x336   : > { %v1526_v58 = vand.u32 4294901760, %v1454_v14 }
 0x338   : > { %v1527_v26 = vsub.f32 %v1454_v14, %v1526_v58 }
 0x33a   : > { %v1528_v30 = vand.u32 4294901760, %v1527_v26 }
 0x33c   : > { %v1529_v31 = vsub.f32 %v1527_v26, %v1528_v30 }
 0x33e   : > { %v1530_v33 = vand.u32 4294901760, %v1529_v31 }
 0x340   : > { %4308 = vmatmul.mubr.f32.vlgmr.msra.gmra.mrb[2].mxu1 %v1530_v33 }
 0x341   : > { %4311 = vmatpush3.msra.mxu1 %v1541_v32  ;;  %4312 = vmatprep.mubr.msk.f32.mxu1 %vm5336_vm4, %v5337_v47 }
 0x342   : > { %4315 = vmatprep.subr.mxu1 %v5337_v47 }
 0x348   : > { %4313 = vmatmul.mubr.f32.vlgmr.msra.gmra.mrb[2].mxu1 %v1526_v58 }
 0x349   : > { %4316 = vmatpush3.msra.mxu1 %v1538_v40  ;;  %4317 = vmatprep.mubr.msk.f32.mxu1 %vm5336_vm4, %v5337_v47 }
 0x34a   : > { %4320 = vmatprep.subr.mxu1 %v5337_v47 }
 0x350   : > { %4318 = vmatmul.mubr.f32.vlgmr.msra.gmra.mrb[2].mxu1 %v1527_v26 }
 0x351   : > { %4321 = vmatpush3.msra.mxu1 %v1461_v37  ;;  %4322 = vmatprep.mubr.msk.f32.mxu1 %vm5336_vm4, %v5337_v47 }
 0x352   : > { %4325 = vmatprep.subr.mxu1 %v5337_v47 }
 0x358   : > { %4323 = vmatmul.mubr.f32.vlgmr.msra.gmra.mrb[2].mxu1 %v1528_v30 }
 0x359   : > { %4326 = vmatpush3.msra.mxu1 %v1539_v48  ;;  %4327 = vmatprep.mubr.msk.f32.mxu1 %vm5336_vm4, %v5337_v47 }
 0x35a   : > { %4330 = vmatprep.subr.mxu1 %v5337_v47 }
 0x360   : > { %4328 = vmatmul.mubr.f32.vlgmr.msra.gmra.mrb[2].mxu1 %v1526_v58 }
 0x361   : > { %4331 = vmatpush3.msra.mxu1 %v1461_v37  ;;  %4332 = vmatprep.mubr.msk.f32.mxu1 %vm5336_vm4, %v5337_v47 }
 0x362   : > { %4587 = vmatprep.subr.bf16.mxu1 %v5335_v43 }
 0x368   : > { %4333 = vmatmul.mubr.f32.vlgmr.msra.gmra.mrb[2].mxu1 %v1526_v58  ;;  %v4944_v58 = vld [vmem:[%s5790_s19 + $0x10] sm:$0xf]  ;;  %s4096_s19 = sshll.u32 %s6421_s23, 1 }
 0x369   : > { %4339 = vmatprep.mubr.msk.f32.mxu1 %vm5336_vm4, %v5337_v47  ;;  %s3885_s3 = sadd.s32 %s6422_s29, %s4096_s19 }
 0x36a   : > { %s4097_s26 = sshll.u32 %s3885_s3, 7 }
 0x36b   : > { %s6249_s2 = scalar_lea.hbm %s6423_s4, %s4097_s26 }
 0x43b   : > { %v1902_v8 = vpop.f32.mrb[2].mxu1 }
 0x43c   : > { %v1909_v34 = vrot.slane %v1902_v8, %v5945_v59  ;;  %v4334_v1 = vpop.f32.mrb[3].mxu1  ;;  %v1915_v36 = vrot.slane %v1902_v8, %v5948_v60 }
 0x43e   : > { %v1910_v35 = vmul.f32 %v1909_v34, %v6020_v50  ;;  %v1911_v2 = vmul.f32 %v1909_v34, %v6018_v61  ;;  %v2046_v34 = vsub.f32 %v2044_v17, %v2045_v19 }
 0x440   : > { %v1916_v0 = vadd.f32 %v1915_v36, %v1910_v35  ;;  %v1917_v39 = vadd.f32 %v1915_v36, %v1911_v2 }
 0x442   : > { %v1918_v41 = vsub.f32 0.0, %v1916_v0  ;;  %v1919_v42 = vsub.f32 0.0, %v1917_v39  ;;  %v6130_v39 = vand.u32 4294901760, %v2046_v34 }
 0x444   : > { %v1920_v11 = vmul.f32 1.442695, %v1918_v41  ;;  %v1922_v44 = vmul.f32 1.442695, %v1919_v42 }
 0x446   : > { %4928 = vpow2.f32 %v1920_v11 }
 0x447   : > { %4930 = vpow2.f32 %v1922_v44 }
 0x450   : > { %v4929_v45 = vpop.eup %4928 }
 0x451   : > { %v4931_v46 = vpop.eup %4930  ;;  %v1924_v49 = vadd.f32 1.0, %v4929_v45 }
 0x452   : > { %v1925_v56 = vadd.f32 1.0, %v4931_v46 }
 0x453   : > { %4932 = vrcp.f32 %v1924_v49 }
 0x454   : > { %4934 = vrcp.f32 %v1925_v56 }
 0x45d   : > { %v4933_v59 = vpop.eup %4932 }
 0x45e   : > { %v4935_v50 = vpop.eup %4934  ;;  %v1930_v62 = vmul.f32 12.0, %v4933_v59  ;;  %v1954_v59 = vld [vmem:[#allocation14] sm:$0xff] }
 0x45f   : > { %v1931_v61 = vmul.f32 12.0, %v4935_v50  ;;  %v1955_v50 = vld [vmem:[#allocation14 + $0x8] sm:$0xff] }
 0x460   : > { %v1932_v63 = vmul.f32 1.442695, %v1930_v62  ;;  %v2439_v62 = vand.u32 4294901760, %v1954_v59 }
 0x461   : > { %v1934_v60 = vmul.f32 1.442695, %v1931_v61  ;;  %v2442_v61 = vand.u32 4294901760, %v1955_v50 }
 0x462   : > { %4936 = vpow2.f32 %v1932_v63 }
 0x463   : > { %4938 = vpow2.f32 %v1934_v60  ;;  %v6154_v63 = vpack.c.bf16 %v2442_v61, %v2439_v62  ;;  %v2519_v60 = vsub.f32 %v1954_v59, %v2439_v62 }
 0x46c   : > { %v4937_v3 = vpop.eup %4936 }
 0x46d   : > { %v4939_v4 = vpop.eup %4938  ;;  %v1938_v27 = vrot.slane %v4937_v3, 6  ;;  %v2924_v28 = vand.u32 4294901760, %v4937_v3 }
 0x46e   : > { %v1939_v37 = vrot.slane %v4939_v4, 6  ;;  %v2927_v38 = vand.u32 4294901760, %v4939_v4 }
 0x46f   : > { %1941 = vrot.lane.b32.xlu0 %v1938_v27, %s5339_s6  ;;  %v3002_v51 = vsub.f32 %v4937_v3, %v2924_v28  ;;  %v2526_v3 = vsub.f32 %v1955_v50, %v2442_v61 }
 0x470   : > { %v1940_v52 = vsel %vm1456_vm7, %v1938_v27, %v1939_v37  ;;  %v3009_v54 = vsub.f32 %v4939_v4, %v2927_v38  ;;  %v6106_v18 = vpack.c.bf16 %v2927_v38, %v2924_v28  ;;  %v1956_v4 = vld [vmem:[#allocation14 + $0x10] sm:$0xff]  ;;  %v1957_v27 = vld [vmem:[#allocation14 + $0x18] sm:$0xff]  ;;  %v2520_v38 = vand.u32 4294901760, %v2519_v60 }
 0x471   : > { %1943 = vrot.lane.b32.xlu1 %v1940_v52, %s5339_s6  ;;  %v3003_v53 = vand.u32 4294901760, %v3002_v51  ;;  %v2445_v28 = vand.u32 4294901760, %v1956_v4 }
 0x472   : > { %v3010_v55 = vand.u32 4294901760, %v3009_v54  ;;  %v4648_v16 = vpack.c.bf16 %v3009_v54, %v3002_v51 }
 0x473   : > { %1945 = vrot.lane.b32.xlu0 %v1939_v37, %s5339_s6  ;;  %v3004_v57 = vsub.f32 %v3002_v51, %v3003_v53  ;;  %v2448_v37 = vand.u32 4294901760, %v1957_v27  ;;  %v2527_v51 = vand.u32 4294901760, %v2526_v3 }
 0x474   : > { %v3011_v6 = vsub.f32 %v3009_v54, %v3010_v55  ;;  %v4654_v7 = vpack.c.bf16 %v3010_v55, %v3003_v53  ;;  %v2521_v54 = vsub.f32 %v2519_v60, %v2520_v38  ;;  %v2533_v55 = vsub.f32 %v1956_v4, %v2445_v28 }
 0x475   : > { %v3005_v9 = vand.u32 4294901760, %v3004_v57  ;;  %v6160_v52 = vpack.c.bf16 %v2448_v37, %v2445_v28  ;;  %v2528_v53 = vsub.f32 %v2526_v3, %v2527_v51  ;;  %v2540_v57 = vsub.f32 %v1957_v27, %v2448_v37 }
 0x476   : > { %v3012_v10 = vand.u32 4294901760, %v3011_v6  ;;  %v2522_v5 = vand.u32 4294901760, %v2521_v54 }
 0x477   : > { %v2529_v6 = vand.u32 4294901760, %v2528_v53 }
 0x478   : > { %v4645_v13 = vpack.c.bf16 %v3012_v10, %v3005_v9  ;;  %v2534_v9 = vand.u32 4294901760, %v2533_v55  ;;  %v2541_v10 = vand.u32 4294901760, %v2540_v57 }
 0x479   : > { %v6166_v12 = vpack.c.bf16 %v2529_v6, %v2522_v5 }
 0x47a   : > { %4646 = vmatpush3.bf16.msra.mxu0 %v4645_v13  ;;  %v2535_v13 = vsub.f32 %v2533_v55, %v2534_v9 }
 0x47b   : > { %4647 = vmatprep.subr.bf16.mxu0 %v5335_v43 }
 0x47d   : > { %4455 = vmatmul.mubr.f32.vlgmr.msra.gmra.mrb[2].mxu0 %v6098_v15 }
 0x47e   : > { %4649 = vmatpush3.bf16.msra.mxu0 %v4648_v16  ;;  %4461 = vmatprep.mubr.msk.f32.mxu0 %vm5336_vm4, %v5337_v47  ;;  %v2536_v16 = vand.u32 4294901760, %v2535_v13 }
 0x47f   : > { %4650 = vmatprep.subr.bf16.mxu0 %v5335_v43 }
 0x485   : > { %4462 = vmatmul.mubr.f32.vlgmr.msra.gmra.mrb[2].mxu0 %v2044_v17 }
 0x486   : > { %4652 = vmatpush3.bf16.msra.mxu0 %v6106_v18  ;;  %4468 = vmatprep.mubr.msk.f32.mxu0 %vm5336_vm4, %v5337_v47 }
 0x487   : > { %4653 = vmatprep.subr.bf16.mxu0 %v5335_v43 }
 0x48d   : > { %4469 = vmatmul.mubr.f32.vlgmr.msra.gmra.mrb[2].mxu0 %v2045_v19 }
 0x48e   : > { %4655 = vmatpush3.bf16.msra.mxu0 %v4654_v7  ;;  %4475 = vmatprep.mubr.msk.f32.mxu0 %vm5336_vm4, %v5337_v47  ;;  %v6170_v7 = vpack.c.bf16 %v2526_v3, %v2519_v60 }
 0x48f   : > { %4656 = vmatprep.subr.bf16.mxu0 %v5335_v43 }
 0x495   : > { %4476 = vmatmul.mubr.f32.vlgmr.msra.gmra.mrb[2].mxu0 %v6098_v15 }
 0x496   : > { %4658 = vmatpush3.bf16.msra.mxu0 %v6106_v18  ;;  %4482 = vmatprep.mubr.msk.f32.mxu0 %vm5336_vm4, %v5337_v47 }
 0x497   : > { %4659 = vmatprep.subr.bf16.mxu0 %v5335_v43 }
 0x49d   : > { %4483 = vmatmul.mubr.f32.vlgmr.msra.gmra.mrb[2].mxu0 %v6098_v15 }
 0x49e   : > { %4493 = vmatprep.mubr.msk.f32.mxu0 %vm5336_vm4, %v5337_v47  ;;  %4661 = vmatpush3.bf16.msra.mxu0 %v6154_v63 }
 0x49f   : > { %4662 = vmatprep.subr.bf16.mxu0 %v5335_v43 }
 0x4a2   : > { %4664 = vmatpush3.bf16.msra.mxu0 %v6160_v52 }
 0x4a3   : > { %4665 = vmatprep.subr.bf16.mxu0 %v5335_v43 }
 0x4e1   : > { %v1942_v20 = vpop.permute.xlu0 %1941 }
 0x4e2   : > { %v1950_v22 = vmul.f32 %v4942_v21, %v1942_v20  ;;  %v6172_v20 = vpack.c.bf16 %v2540_v57, %v2533_v55  ;;  %v6174_v21 = vpack.c.bf16 %v2527_v51, %v2520_v38 }
 0x4e3   : > { %v1944_v23 = vpop.permute.xlu1 %1943 }
 0x4e4   : > { %v1961_v40 = vrot.slane %v1950_v22, 2  ;;  %v1951_v25 = vmul.f32 %v4943_v24, %v1944_v23  ;;  %v6176_v22 = vpack.c.bf16 %v2541_v10, %v2534_v9 }
 0x4e5   : > { %v1946_v14 = vpop.permute.xlu0 %1945 }
 0x4e6   : > { %v1962_v48 = vrot.slane %v1951_v25, 2  ;;  %v1952_v26 = vmul.f32 %v4944_v58, %v1946_v14 }
 0x4e8   : > { %v1964_v29 = vrot.slane %v1952_v26, 2  ;;  %v1963_v30 = vsel %vm666_vm1, %v1961_v40, %v1962_v48 }
 0x4e9   : > { %1966 = vrot.lane.b32.xlu1 %v1963_v30, %s5331_s8 }
 0x4ea   : > { %v1965_v31 = vsel %vm666_vm1, %v1962_v48, %v1964_v29 }
 0x4eb   : > { %1968 = vrot.lane.b32.xlu0 %v1965_v31, %s5331_s8  ;;  %s5340_s8 = smov [#allocation16]  }
 0x4ec   : > { %s5181_s21 = sshll.u32 %s5340_s8, 4  ;;  %s5182_s21 = int_to_ptr.vmem [resolvable:$false] %s5181_s21 }
 0x4ed   : > { %s5183_s16 = scalar_lea.vmem %s5182_s21, 256  ;;  %p5184_p11 = scmp.lt.s32.totalorder %s6251_s22, %s5182_s21 }
 0x4ee   : > { %p5185_p4 = scmp.lt.s32.totalorder %s5183_s16, %s5177_s1 }
 0x4f0   : > { %p5186_p2 = por %p5185_p4, %p5184_p11 }
 0x4f2   : > { %p5187_p6 = pnand %p5186_p2, %p5180_p8 }
 0x55b   : > { %v1967_v32 = vpop.permute.xlu1 %1966 }
 0x55c   : > { %v1977_v33 = vand.u32 4294901760, %v1967_v32 }
 0x55d   : > { %v1969_v8 = vpop.permute.xlu0 %1968 }
 0x55e   : > { %v2055_v1 = vsub.f32 %v1967_v32, %v1977_v33  ;;  %v1980_v35 = vand.u32 4294901760, %v1969_v8 }
 0x560   : > { %v2056_v2 = vand.u32 4294901760, %v2055_v1  ;;  %v4588_v36 = vpack.c.bf16 %v1980_v35, %v1977_v33  ;;  %v2062_v0 = vsub.f32 %v1969_v8, %v1980_v35 }
 0x562   : > { %v2057_v41 = vsub.f32 %v2055_v1, %v2056_v2  ;;  %v2063_v42 = vand.u32 4294901760, %v2062_v0  ;;  %4589 = vmatpush3.bf16.msra.mxu1 %v4588_v36  ;;  %v4594_v49 = vpack.c.bf16 %v2062_v0, %v2055_v1 }
 0x563   : > { %4590 = vmatprep.subr.bf16.mxu1 %v5335_v43 }
 0x564   : > { %v2064_v11 = vsub.f32 %v2062_v0, %v2063_v42  ;;  %v2058_v44 = vand.u32 4294901760, %v2057_v41  ;;  %v4600_v56 = vpack.c.bf16 %v2063_v42, %v2056_v2 }
 0x565   : > { %4340 = vmatmul.mubr.f32.vlgmr.msra.gmra.mrb[4].mxu1 %v6130_v39 }
 0x566   : > { %v2065_v45 = vand.u32 4294901760, %v2064_v11  ;;  %4346 = vmatprep.mubr.msk.f32.mxu1 %vm5336_vm4, %v5337_v47 }
 0x568   : > { %v4591_v46 = vpack.c.bf16 %v2065_v45, %v2058_v44 }
 0x56a   : > { %4592 = vmatpush3.bf16.msra.mxu1 %v4591_v46 }
 0x56b   : > { %4593 = vmatprep.subr.bf16.mxu1 %v5335_v43 }
 0x56d   : > { %4347 = vmatmul.mubr.f32.vlgmr.msra.gmra.mrb[4].mxu1 %v6098_v15 }
 0x56e   : > { %4595 = vmatpush3.bf16.msra.mxu1 %v4594_v49  ;;  %4353 = vmatprep.mubr.msk.f32.mxu1 %vm5336_vm4, %v5337_v47 }
 0x56f   : > { %4596 = vmatprep.subr.bf16.mxu1 %v5335_v43 }
 0x570   : > { %v3378_v23 = vpop.f32.mrb[2].mxu0 }
 0x571   : > { %v4484_v40 = vpop.f32.mrb[3].mxu0 }
 0x575   : > { %4354 = vmatmul.mubr.f32.vlgmr.msra.gmra.mrb[4].mxu1 %v2044_v17 }
 0x576   : > { %4598 = vmatpush3.bf16.msra.mxu1 %v4588_v36  ;;  %4360 = vmatprep.mubr.msk.f32.mxu1 %vm5336_vm4, %v5337_v47 }
 0x577   : > { %4599 = vmatprep.subr.bf16.mxu1 %v5335_v43 }
 0x57d   : > { %4361 = vmatmul.mubr.f32.vlgmr.msra.gmra.mrb[4].mxu1 %v2045_v19 }
 0x57e   : > { %4601 = vmatpush3.bf16.msra.mxu1 %v4600_v56  ;;  %4367 = vmatprep.mubr.msk.f32.mxu1 %vm5336_vm4, %v5337_v47 }
 0x57f   : > { %4602 = vmatprep.subr.bf16.mxu1 %v5335_v43 }
 0x585   : > { %4368 = vmatmul.mubr.f32.vlgmr.msra.gmra.mrb[4].mxu1 %v6098_v15 }
 0x586   : > { %4604 = vmatpush3.bf16.msra.mxu1 %v4588_v36  ;;  %4374 = vmatprep.mubr.msk.f32.mxu1 %vm5336_vm4, %v5337_v47 }
 0x587   : > { %4605 = vmatprep.subr.bf16.mxu1 %v5335_v43 }
 0x58d   : > { %4375 = vmatmul.mubr.f32.vlgmr.msra.gmra.mrb[4].mxu1 %v6098_v15  ;;  %v2542_v15 = vsub.f32 %v2540_v57, %v2541_v10 }
 0x58e   : > { %4385 = vmatprep.mubr.msk.f32.mxu1 %vm5336_vm4, %v5337_v47  ;;  %4607 = vmatpush3.bf16.msra.mxu1 %v6154_v63 }
 0x58f   : > { %4608 = vmatprep.subr.bf16.mxu1 %v5335_v43  ;;  %v2543_v17 = vand.u32 4294901760, %v2542_v15 }
 0x591   : > { %v6168_v19 = vpack.c.bf16 %v2543_v17, %v2536_v16 }
 0x592   : > { %4610 = vmatpush3.bf16.msra.mxu1 %v6160_v52 }
 0x593   : > { %4611 = vmatprep.subr.bf16.mxu1 %v5335_v43 }
 0x660   : > { %v2431_v24 = vpop.f32.mrb[4].mxu1 }
 0x661   : > { %v2436_v25 = vsel %vm899_vm5, %v2431_v24, 0  ;;  %v4376_v14 = vpop.f32.mrb[5].mxu1 }
 0x662   : > { %v2507_v48 = vand.u32 4294901760, %v2436_v25 }
 0x664   : > { %v2508_v58 = vsub.f32 %v2436_v25, %v2507_v48 }
 0x666   : > { %v2509_v26 = vand.u32 4294901760, %v2508_v58 }
 0x668   : > { %v2510_v29 = vsub.f32 %v2508_v58, %v2509_v26 }
 0x66a   : > { %v2511_v30 = vand.u32 4294901760, %v2510_v29 }
 0x66c   : > { %4386 = vmatmul.mubr.f32.vlgmr.msra.gmra.mrb[6].mxu1 %v2511_v30 }
 0x66d   : > { %4613 = vmatpush3.bf16.msra.mxu1 %v6166_v12  ;;  %4396 = vmatprep.mubr.msk.f32.mxu1 %vm5336_vm4, %v5337_v47 }
 0x66e   : > { %4614 = vmatprep.subr.bf16.mxu1 %v5335_v43 }
 0x671   : > { %4616 = vmatpush3.bf16.msra.mxu1 %v6168_v19 }
 0x672   : > { %4617 = vmatprep.subr.bf16.mxu1 %v5335_v43 }
 0x674   : > { %4397 = vmatmul.mubr.f32.vlgmr.msra.gmra.mrb[6].mxu1 %v2507_v48 }
 0x675   : > { %4619 = vmatpush3.bf16.msra.mxu1 %v6170_v7  ;;  %4407 = vmatprep.mubr.msk.f32.mxu1 %vm5336_vm4, %v5337_v47 }
 0x676   : > { %4620 = vmatprep.subr.bf16.mxu1 %v5335_v43 }
 0x679   : > { %4622 = vmatpush3.bf16.msra.mxu1 %v6172_v20 }
 0x67a   : > { %4623 = vmatprep.subr.bf16.mxu1 %v5335_v43 }
 0x67c   : > { %4408 = vmatmul.mubr.f32.vlgmr.msra.gmra.mrb[6].mxu1 %v2508_v58 }
 0x67d   : > { %4625 = vmatpush3.bf16.msra.mxu1 %v6154_v63  ;;  %4418 = vmatprep.mubr.msk.f32.mxu1 %vm5336_vm4, %v5337_v47 }
 0x67e   : > { %4626 = vmatprep.subr.bf16.mxu1 %v5335_v43 }
 0x681   : > { %4628 = vmatpush3.bf16.msra.mxu1 %v6160_v52 }
 0x682   : > { %4629 = vmatprep.subr.bf16.mxu1 %v5335_v43 }
 0x684   : > { %4419 = vmatmul.mubr.f32.vlgmr.msra.gmra.mrb[6].mxu1 %v2509_v26 }
 0x685   : > { %4631 = vmatpush3.bf16.msra.mxu1 %v6174_v21  ;;  %4429 = vmatprep.mubr.msk.f32.mxu1 %vm5336_vm4, %v5337_v47 }
 0x686   : > { %4632 = vmatprep.subr.bf16.mxu1 %v5335_v43 }
 0x689   : > { %4634 = vmatpush3.bf16.msra.mxu1 %v6176_v22 }
 0x68a   : > { %4635 = vmatprep.subr.bf16.mxu1 %v5335_v43 }
 0x68c   : > { %4430 = vmatmul.mubr.f32.vlgmr.msra.gmra.mrb[6].mxu1 %v2507_v48 }
 0x68d   : > { %4637 = vmatpush3.bf16.msra.mxu1 %v6154_v63  ;;  %4440 = vmatprep.mubr.msk.f32.mxu1 %vm5336_vm4, %v5337_v47 }
 0x68e   : > { %4638 = vmatprep.subr.bf16.mxu1 %v5335_v43 }
 0x691   : > { %4640 = vmatpush3.bf16.msra.mxu1 %v6160_v52 }
 0x692   : > { %4641 = vmatprep.subr.bf16.mxu1 %v5335_v43 }
 0x694   : > { %4441 = vmatmul.mubr.f32.vlgmr.msra.gmra.mrb[6].mxu1 %v2507_v48 }
 0x695   : > { %4643 = vmatpush3.bf16.msra.mxu1 %v6106_v18  ;;  %4447 = vmatprep.mubr.msk.f32.mxu1 %vm5336_vm4, %v5337_v47 }
 0x698   : > { %4448 = vmatmul.mubr.f32.vlgmr.msra.gmra.mrb[8].mxu1 %v6130_v39 }
 0x767   : > { %v2919_v31 = vpop.f32.mrb[6].mxu1 }
 0x768   : > { %v4442_v32 = vpop.f32.mrb[7].mxu1 }
 0x76b   : > { %v2996_v33 = vpop.f32.mrb[8].mxu1 }
 0x76c   : > { %v4696_v8 = vadd.f32 %v3378_v23, %v2996_v33  ;;  %v4449_v34 = vpop.f32.mrb[9].mxu1 }
 0x76e   : > { %v3383_v1 = vsel %vm899_vm5, %v4696_v8, 0 }
 0x76f   : > { %v3454_v35 = vand.u32 4294901760, %v3383_v1 }
 0x771   : > { %v3455_v2 = vsub.f32 %v3383_v1, %v3454_v35 }
 0x773   : > { %v3456_v36 = vand.u32 4294901760, %v3455_v2 }
 0x775   : > { %v3457_v0 = vsub.f32 %v3455_v2, %v3456_v36 }
 0x777   : > { %v3458_v41 = vand.u32 4294901760, %v3457_v0 }
 0x779   : > { %4494 = vmatmul.mubr.f32.vlgmr.msra.gmra.mrb[4].mxu0 %v3458_v41 }
 0x77a   : > { %4667 = vmatpush3.bf16.msra.mxu0 %v6166_v12  ;;  %4504 = vmatprep.mubr.msk.f32.mxu0 %vm5336_vm4, %v5337_v47 }
 0x77b   : > { %4668 = vmatprep.subr.bf16.mxu0 %v5335_v43 }
 0x77e   : > { %4670 = vmatpush3.bf16.msra.mxu0 %v6168_v19 }
 0x77f   : > { %4671 = vmatprep.subr.bf16.mxu0 %v5335_v43 }
 0x781   : > { %4505 = vmatmul.mubr.f32.vlgmr.msra.gmra.mrb[4].mxu0 %v3454_v35 }
 0x782   : > { %4673 = vmatpush3.bf16.msra.mxu0 %v6170_v7  ;;  %4515 = vmatprep.mubr.msk.f32.mxu0 %vm5336_vm4, %v5337_v47 }
 0x783   : > { %4674 = vmatprep.subr.bf16.mxu0 %v5335_v43 }
 0x786   : > { %4676 = vmatpush3.bf16.msra.mxu0 %v6172_v20 }
 0x787   : > { %4677 = vmatprep.subr.bf16.mxu0 %v5335_v43 }
 0x789   : > { %4516 = vmatmul.mubr.f32.vlgmr.msra.gmra.mrb[4].mxu0 %v3455_v2 }
 0x78a   : > { %4679 = vmatpush3.bf16.msra.mxu0 %v6154_v63  ;;  %4526 = vmatprep.mubr.msk.f32.mxu0 %vm5336_vm4, %v5337_v47 }
 0x78b   : > { %4680 = vmatprep.subr.bf16.mxu0 %v5335_v43 }
 0x78e   : > { %4682 = vmatpush3.bf16.msra.mxu0 %v6160_v52 }
 0x78f   : > { %4683 = vmatprep.subr.bf16.mxu0 %v5335_v43 }
 0x791   : > { %4527 = vmatmul.mubr.f32.vlgmr.msra.gmra.mrb[4].mxu0 %v3456_v36 }
 0x792   : > { %4685 = vmatpush3.bf16.msra.mxu0 %v6174_v21  ;;  %4537 = vmatprep.mubr.msk.f32.mxu0 %vm5336_vm4, %v5337_v47 }
 0x793   : > { %4686 = vmatprep.subr.bf16.mxu0 %v5335_v43 }
 0x796   : > { %4688 = vmatpush3.bf16.msra.mxu0 %v6176_v22 }
 0x797   : > { %4689 = vmatprep.subr.bf16.mxu0 %v5335_v43 }
 0x799   : > { %4538 = vmatmul.mubr.f32.vlgmr.msra.gmra.mrb[4].mxu0 %v3454_v35 }
 0x79a   : > { %4691 = vmatpush3.bf16.msra.mxu0 %v6154_v63  ;;  %4548 = vmatprep.mubr.msk.f32.mxu0 %vm5336_vm4, %v5337_v47 }
 0x79b   : > { %4692 = vmatprep.subr.bf16.mxu0 %v5335_v43 }
 0x79e   : > { %4694 = vmatpush3.bf16.msra.mxu0 %v6160_v52 }
 0x7a1   : > { %4549 = vmatmul.mubr.f32.vlgmr.msra.gmra.mrb[4].mxu0 %v3454_v35 }
 0x874   : > { %v3866_v18 = vpop.f32.mrb[4].mxu0 }
 0x875   : > { %4940 = vrcp.f32 %v3866_v18  ;;  %v4550_v39 = vpop.f32.mrb[5].mxu0 }
 0x87f   : > { %v4941_v42 = vpop.eup %4940 }
 0x880   : > { %v3871_v11 = vmul.f32 %v4941_v42, %v2919_v31 }
 0x882   : > { %3872 = vst.msk [vmem:[%s500_s27] sm:$0xff] %vm1972_vm9, %v3871_v11 }
 0x883   : > { %5190 = shalt.err (!%p5187_p6)
}
 0x884   : > { %s5191_s12 = scalar_lea.hbm %s6249_s2, 128  ;;  %s5195_s23 = scalar_lea.hbm %s6423_s4, 512 }
 0x885   : > { %p5192_p9 = scmp.ne.s32.totalorder %s6249_s2, %s5191_s12  ;;  %p5196_p1 = scmp.lt.u32.totalorder %s6249_s2, %s6423_s4 }
 0x886   : > { %p5197_p3 = scmp.lt.u32.totalorder %s5195_s23, %s5191_s12  ;;  %p5199_p5 = scmp.lt.u32.totalorder %s5191_s12, %s6249_s2 }
 0x887   : > { %p5193_p0 = pnand %p5192_p9, %p6424_p12 }
 0x888   : > { %p5198_p7 = por %p5197_p3, %p5196_p1 }
 0x889   : > { %p5194_p13 = pneg %p5193_p0 }
 0x88a   : > { %p5200_p10 = por %p5199_p5, %p5198_p7 }
 0x88c   : > { %p5201_p8 = pnand %p5200_p10, %p5194_p13 }
 0x88e   : > { %5204 = shalt.err (!%p5201_p8)
}
 0x88f   : > { %4781 = dma.vmem_to_hbm [thread:$0]  (%p6424_p12), %s6251_s22, 128, %s6249_s2, %s3874_s18  }
 0x890 PF: > { %s6425_s19 = sld [smem:[#allocation34_spill]]  ;;  %p4822_p11 = scmp.ge.s32.totalorder %s5319_s15, 2 }
 0x891   : > { %s3901_s3 = sand.u32 1, %s5291_s30  }
 0x892   : > { %s3902_s26 = scalar_lea.sflag [#allocation4], %s3901_s3 }
 0x896   : > { %p6426_p4 = scmp.ne.s32.totalorder %s6425_s19, 0 }
 0x898   : > { %p4810_p2 = pnand %p4822_p11, %p6426_p4 }
 0x89a   : > { %5274 = dma.done.wait (!%p4810_p2), %s3902_s26, 128  }
 0x89b   : > { %5276 = vsyncadd (!%p4810_p2), %s3902_s26, 4294967168  ;;  %s32_s15 = sadd.s32 1, %s5319_s15   ;;  %s6427_s27 = sld [smem:[#allocation24_spill]] }
 0x89c   : > { %p29_p6 = scmp.ge.s32.totalorder %s32_s15, 6   ;;  %s6428_s28 = sld [smem:[#allocation25_spill]] }
 0x89d   : > { %s6429_s29 = sld [smem:[#allocation31_spill]]  ;;  %s6430_s25 = sld [smem:[#allocation29_spill]] }
 0x89e   : > { %s6431_s22 = sld [smem:[#allocation33_spill]]  ;;  %s6432_s30 = smov %s5295_s9 }
 0x89f   : > { %s6433_s9 = smov %s5299_s10  ;;  %s6434_s10 = smov %s5688_s5 }
 0x8a0   : > { %s6435_s11 = smov %s5311_s13  ;;  %s6436_s12 = smov %s5315_s14 }
 0x8a1   :  { %31 = sbr.rel (!%p29_p6) target bundleno = 24 (0x18), region = 150 }
 0x8a3   : > { %s6437_s13 = smov %s6430_s25 }
 0x8a4   : > { %s6438_s14 = smov %s6431_s22 }
 0x8a8   :  { %3907 = vsyncpa [#allocation3], 1 }
 0x8a9   :  { %3909 = vsyncpa [#allocation3 + $0x1], 1 }
 0x8aa   :  { %3910 = vsyncpa [#allocation6], 1 }
 0x8ab   :  { %3912 = vsyncpa [#allocation6 + $0x1], 1 }
 0x8ac   :  { %3913 = vsyncpa [#allocation9], 1 }
 0x8ad   :  { %3915 = vsyncpa [#allocation9 + $0x1], 1 }
 0x8ae   :  { %3916 = vsyncpa [#allocation12], 1 }
 0x8af   :  { %3917 = vsyncpa [#allocation15], 1 }
 0x8b0   :  { %3918 = vsyncpa [#allocation4], 1 }
 0x8b1   :  { %3920 = vsyncpa [#allocation4 + $0x1], 1 }

</bundles_post_ra>
